<compile_context>
chip_gen: v5e
topology: v5e:2x2
jax: 0.10.0
libtpu: 0.0.40
codegen_flags: <defaults>
</compile_context>

<pallas_src>
import functools

import jax
import jax.numpy as jnp
from jax.experimental import pallas as pl
from jax.experimental.pallas import tpu as pltpu

# ---------------- KAN hyper-parameters (pykan defaults) ----------------
NUM = 5                      # grid intervals
K = 3                        # spline order
NB = NUM + K                 # number of B-spline basis functions = 8
G = NUM + 2 * K + 1          # extended grid points = 12
GRID_LO, GRID_HI = -1.0, 1.0
H = (GRID_HI - GRID_LO) / NUM                     # uniform knot spacing
KNOTS = tuple(GRID_LO + H * (j - K) for j in range(G))   # compile-time constants
LN_EPS = 1e-5
LANE = 128


# ---------------- shared math (used by the kernels AND the JAX mirror) ----------------
def _kan_math(x, w, gamma, beta, d_out):
    """x: (n, d_in) f32. w: ((NB+1)*d_in, d_out_pad) bf16 (k-major spline rows,
    then base rows, columns zero-padded). gamma/beta: (1, d_out_pad) f32."""
    if x.dtype != jnp.float32:
        x = x.astype(jnp.float32)

    # Degree-0 indicator basis: list of (n, d_in) slabs, d_in stays on lanes.
    basis = [((x >= KNOTS[j]) & (x < KNOTS[j + 1])).astype(jnp.float32)
             for j in range(G - 1)]
    # Cox-de Boor; uniform grid -> denominators are the constant kk*H.
    for kk in range(1, K + 1):
        inv = 1.0 / (kk * H)
        basis = [(x - KNOTS[j]) * inv * basis[j]
                 + (KNOTS[j + kk + 1] - x) * inv * basis[j + 1]
                 for j in range(G - 1 - kk)]
    # basis: NB slabs of (n, d_in)

    silu = x * jax.nn.sigmoid(x)
    # Lane-contiguous flatten, k-major (matches the folded weight layout).
    feats = jnp.concatenate(basis + [silu], axis=-1).astype(jnp.bfloat16)

    # Single fused MXU matmul: spline + base terms together, f32 accumulation.
    y = jnp.dot(feats, w, preferred_element_type=jnp.float32)   # (n, d_out_pad)

    # One-pass LayerNorm over the real d_out columns (padded columns are exactly 0,
    # so they contribute nothing to either sum).
    inv_d = 1.0 / d_out
    mean = jnp.sum(y, axis=-1, keepdims=True) * inv_d
    msq = jnp.sum(y * y, axis=-1, keepdims=True) * inv_d
    var = msq - mean * mean
    yhat = (y - mean) * jax.lax.rsqrt(var + LN_EPS)
    return yhat * gamma + beta          # padded gamma/beta are 0 -> padded out is 0


def _linear_math(x, w, b):
    y = jnp.dot(x.astype(jnp.bfloat16), w, preferred_element_type=jnp.float32)
    return y + b


# ---------------- Pallas kernels ----------------
def _kan_kernel(x_ref, w_ref, gamma_ref, beta_ref, out_ref, *, d_out):
    out_ref[...] = _kan_math(x_ref[...], w_ref[...], gamma_ref[...], beta_ref[...],
                             d_out).astype(out_ref.dtype)


def _linear_kernel(x_ref, w_ref, b_ref, out_ref):
    out_ref[...] = _linear_math(x_ref[...], w_ref[...], b_ref[...]).astype(out_ref.dtype)


# ---------------- wrappers ----------------
def _auto_tb(B):
    """Batch tile: >=2 grid steps when possible (keeps both v7x TCs busy), capped so
    intermediates stay well inside v7x's 64 MiB VMEM for large batches."""
    if B % 16 != 0:
        return B
    tb = B // 2
    while tb > 1024 and tb % 16 == 0:
        tb //= 2
    return tb


def monolayer_kan(x, w, gamma, beta, *, d_out, tb):
    B, d_in = x.shape
    d_out_pad = w.shape[1]
    assert B % tb == 0
    y_pad = pl.pallas_call(
        functools.partial(_kan_kernel, d_out=d_out),
        out_shape=jax.ShapeDtypeStruct((B, d_out_pad), jnp.float32),
        grid_spec=pltpu.PrefetchScalarGridSpec(
            num_scalar_prefetch=0,
            grid=(B // tb,),
            in_specs=[
                pl.BlockSpec((tb, d_in), lambda b: (b, 0)),                  # x tile
                pl.BlockSpec(((NB + 1) * d_in, d_out_pad), lambda b: (0, 0)),  # fused weight
                pl.BlockSpec((1, d_out_pad), lambda b: (0, 0)),              # LN gamma (padded)
                pl.BlockSpec((1, d_out_pad), lambda b: (0, 0)),              # LN beta  (padded)
            ],
            out_specs=pl.BlockSpec((tb, d_out_pad), lambda b: (b, 0)),       # lane-dense out
        ),
        compiler_params=pltpu.CompilerParams(dimension_semantics=("parallel",)),
    )(x, w, gamma, beta)
    return y_pad[:, :d_out]


def linear_proj(x, w, b, *, d_out, tb):
    B, d_model = x.shape
    d_out_pad = w.shape[1]
    assert B % tb == 0
    y_pad = pl.pallas_call(
        _linear_kernel,
        out_shape=jax.ShapeDtypeStruct((B, d_out_pad), jnp.float32),
        grid_spec=pltpu.PrefetchScalarGridSpec(
            num_scalar_prefetch=0,
            grid=(B // tb,),
            in_specs=[
                pl.BlockSpec((tb, d_model), lambda i: (i, 0)),
                pl.BlockSpec((d_model, d_out_pad), lambda i: (0, 0)),
                pl.BlockSpec((1, d_out_pad), lambda i: (0, 0)),
            ],
            out_specs=pl.BlockSpec((tb, d_out_pad), lambda i: (i, 0)),
        ),
        compiler_params=pltpu.CompilerParams(dimension_semantics=("parallel",)),
    )(x, w, b)
    return y_pad[:, :d_out]


def build_forward(d_model, d_out, e_layers):
    @jax.jit
    def forward(x, folded):
        tb = _auto_tb(x.shape[0])
        h = x
        for l in range(e_layers):
            p = folded["kan"][l]
            h = monolayer_kan(h, p["w"], p["gamma"], p["beta"], d_out=d_model, tb=tb)
        pp = folded["proj"]
        return linear_proj(h, pp["w"], pp["b"], d_out=d_out, tb=tb)
    return forward


# ---------------- parameter construction & folding (plain JAX, one-time) ----------------
def _pad_to(n, m=LANE):
    return ((n + m - 1) // m) * m


def _pad_cols(a, width):
    return jnp.pad(a, ((0, 0), (0, width - a.shape[1])))


def make_kan_layer_params(key, d_in, d_out, d_out_pad):
    k_coef, k_sb = jax.random.split(key)
    pts = GRID_LO + H * jnp.arange(-K, NUM + K + 1, dtype=jnp.float32)   # (G,)
    grid = jnp.tile(pts[None, :], (d_in, 1))                             # (d_in, G)

    coef = 0.1 * jax.random.normal(k_coef, (d_in, d_out, NB), jnp.float32)
    scale_base = (jax.random.uniform(k_sb, (d_in, d_out), jnp.float32) * 2.0 - 1.0) / jnp.sqrt(d_in)
    scale_sp = jnp.full((d_in, d_out), 1.0 / jnp.sqrt(d_in), jnp.float32)
    mask = jnp.ones((d_in, d_out), jnp.float32)
    gamma = jnp.ones((d_out,), jnp.float32)
    beta = jnp.zeros((d_out,), jnp.float32)

    raw = dict(grid=grid, coef=coef, scale_base=scale_base, scale_sp=scale_sp,
               mask=mask, gamma=gamma, beta=beta)

    # Fold mask/scales into matmul weights; k-major spline rows, base rows appended.
    w_sp = coef * (scale_sp * mask)[:, :, None]                         # (d_in, d_out, NB)
    w_sp = jnp.transpose(w_sp, (2, 0, 1)).reshape(NB * d_in, d_out)     # row = k*d_in + i
    w_base = scale_base * mask                                          # (d_in, d_out)
    w = jnp.concatenate([w_sp, w_base], axis=0)                         # ((NB+1)*d_in, d_out)

    folded = dict(
        w=_pad_cols(w, d_out_pad).astype(jnp.bfloat16),
        gamma=_pad_cols(gamma[None, :], d_out_pad),
        beta=_pad_cols(beta[None, :], d_out_pad),
    )
    return raw, folded


def make_linear_params(key, d_in, d_out, d_out_pad):
    kw, kb = jax.random.split(key)
    bound = float(1.0 / (d_in ** 0.5))
    w = jax.random.uniform(kw, (d_in, d_out), jnp.float32, -bound, bound)
    b = jax.random.uniform(kb, (d_out,), jnp.float32, -bound, bound)
    raw = dict(w=w, b=b)
    folded = dict(w=_pad_cols(w, d_out_pad).astype(jnp.bfloat16),
                  b=_pad_cols(b[None, :], d_out_pad))
    return raw, folded


def make_model_params(key, d_in, d_model, d_out, e_layers):
    keys = jax.random.split(key, e_layers + 1)
    d_model_pad, d_out_pad = _pad_to(d_model), _pad_to(d_out)
    raw_kan, folded_kan = [], []
    r, f = make_kan_layer_params(keys[0], d_in, d_model, d_model_pad)
    raw_kan.append(r); folded_kan.append(f)
    for l in range(1, e_layers):
        r, f = make_kan_layer_params(keys[l], d_model, d_model, d_model_pad)
        raw_kan.append(r); folded_kan.append(f)
    raw_proj, folded_proj = make_linear_params(keys[-1], d_model, d_out, d_out_pad)
    return (dict(kan=raw_kan, proj=raw_proj),
            dict(kan=folded_kan, proj=folded_proj))


# ---------------- references for verification ----------------
def _kan_layer_reference(x, raw):
    """Original (unfolded) f32 semantics with the explicit grid array."""
    grid = raw["grid"]
    xe, ge = x[:, :, None], grid[None, :, :]
    b = jnp.logical_and(xe >= ge[:, :, :-1], xe < ge[:, :, 1:]).astype(jnp.float32)
    for kk in range(1, K + 1):
        b = ((xe - ge[:, :, :-(kk + 1)]) / (ge[:, :, kk:-1] - ge[:, :, :-(kk + 1)]) * b[:, :, :-1]
             + (ge[:, :, kk + 1:] - xe) / (ge[:, :, kk + 1:] - ge[:, :, 1:-kk]) * b[:, :, 1:])
    spline = jnp.einsum("bik,iok->bio", b, raw["coef"])
    silu = x * jax.nn.sigmoid(x)
    y = jnp.sum(raw["mask"][None] * (raw["scale_base"][None] * silu[:, :, None]
                                     + raw["scale_sp"][None] * spline), axis=1)
    mu = y.mean(-1, keepdims=True)
    var = ((y - mu) ** 2).mean(-1, keepdims=True)
    return (y - mu) / jnp.sqrt(var + LN_EPS) * raw["gamma"][None, :] + raw["beta"][None, :]


def reference_forward(x, raw, e_layers):
    h = x
    for l in range(e_layers):
        h = _kan_layer_reference(h, raw["kan"][l])
    return h @ raw["proj"]["w"] + raw["proj"]["b"][None, :]


def mirror_forward(x, folded, d_model, d_out, e_layers):
    """Plain-JAX replica of exactly what the kernels compute (folded bf16 weights)."""
    h = x
    for l in range(e_layers):
        p = folded["kan"][l]
        h = _kan_math(h, p["w"], p["gamma"], p["beta"], d_model)[:, :d_model]
    pp = folded["proj"]
    return _linear_math(h, pp["w"], pp["b"])[:, :d_out]


# ---------------- demo / self-check ----------------
if __name__ == "__main__":
    batch, d_in, d_model, d_out, e_layers = 64, 32, 32, 16, 2
    key = jax.random.PRNGKey(0)
    k_x, k_p = jax.random.split(key)

    # Inputs mostly inside the spline grid range to exercise the B-spline path.
    x = jax.random.uniform(k_x, (batch, d_in), jnp.float32, -0.95, 0.95)

    raw, folded = make_model_params(k_p, d_in, d_model, d_out, e_layers)
    forward = build_forward(d_model, d_out, e_layers)

    out = jax.block_until_ready(forward(x, folded))
    assert out.shape == (batch, d_out)

    # Tight check: kernel vs identical folded/bf16 math in plain JAX (tiling correctness).
    mirror = mirror_forward(x, folded, d_model, d_out, e_layers)
    assert jnp.allclose(out, mirror, atol=1e-3, rtol=1e-3), "kernel vs folded-JAX mirror mismatch"

    # Semantic check: kernel vs original unfolded f32 reference (bf16 MXU operands -> loose tol).
    ref = reference_forward(x, raw, e_layers)
    assert jnp.allclose(out, ref, atol=5e-2, rtol=5e-2), "kernel vs f32 reference mismatch"

    print("KERNEL_OK")
</pallas_src>

<mosaic_0001>
module attributes {stable_mosaic.version = 11 : i64} {
  func.func @_linear_kernel(%arg0: i32, %arg1: memref<32x32xf32, #tpu.memory_space<vmem>>, %arg2: memref<32x128xbf16, #tpu.memory_space<vmem>>, %arg3: memref<1x128xf32, #tpu.memory_space<vmem>>, %arg4: memref<32x128xf32, #tpu.memory_space<vmem>>) attributes {dimension_semantics = [#tpu.dimension_semantics<parallel>], iteration_bounds = array<i64: 2>, scalar_prefetch = 0 : i64, scratch_operands = 0 : i64, tpu.core_type = #tpu.core_type<tc>, window_params = [{transform_indices = @transform_0, window_bounds = array<i64: 32, 32>}, {pipeline_mode = #tpu.pipeline_mode<synchronous>, transform_indices = @transform_1, window_bounds = array<i64: 32, 128>}, {pipeline_mode = #tpu.pipeline_mode<synchronous>, transform_indices = @transform_2, window_bounds = array<i64: 1, 128>}, {transform_indices = @transform_3, window_bounds = array<i64: 32, 128>}]} {
    %c0 = arith.constant 0 : index
    %c0_0 = arith.constant 0 : index
    %0 = vector.load %arg1[%c0, %c0_0] : memref<32x32xf32, #tpu.memory_space<vmem>>, vector<32x32xf32>
    %c0_1 = arith.constant 0 : index
    %c0_2 = arith.constant 0 : index
    %1 = vector.load %arg2[%c0_1, %c0_2] : memref<32x128xbf16, #tpu.memory_space<vmem>>, vector<32x128xbf16>
    %c0_3 = arith.constant 0 : index
    %c0_4 = arith.constant 0 : index
    %2 = vector.load %arg3[%c0_3, %c0_4] : memref<1x128xf32, #tpu.memory_space<vmem>>, vector<1x128xf32>
    %3 = arith.truncf %0 : vector<32x32xf32> to vector<32x32xbf16>
    %cst = arith.constant dense<0.000000e+00> : vector<32x128xf32>
    %4 = tpu.matmul %3, %1, %cst {dimension_numbers = #tpu.dot_dimension_numbers<[1], [0], [0], [1], [0, 0, 1, 1], [], []>} : vector<32x32xbf16>, vector<32x128xbf16>, vector<32x128xf32> -> vector<32x128xf32>
    %5 = vector.broadcast %2 : vector<1x128xf32> to vector<32x128xf32>
    %6 = arith.addf %4, %5 : vector<32x128xf32>
    %c0_5 = arith.constant 0 : index
    %c0_6 = arith.constant 0 : index
    %7 = vector.load %arg4[%c0_5, %c0_6] : memref<32x128xf32, #tpu.memory_space<vmem>>, vector<32x128xf32>
    tpu.vector_store %arg4[%c0_5, %c0_6], %6 {strides = array<i32>} : memref<32x128xf32, #tpu.memory_space<vmem>>, vector<32x128xf32>,
    return
  }
  func.func @transform_0(%arg0: i32) -> (i32, i32) {
    %c0_i32 = arith.constant 0 : i32
    %c0_i32_0 = arith.constant 0 : i32
    return %arg0, %c0_i32 : i32, i32
  }
  func.func @transform_1(%arg0: i32) -> (i32, i32) {
    %c0_i32 = arith.constant 0 : i32
    %c0_i32_0 = arith.constant 0 : i32
    %c0_i32_1 = arith.constant 0 : i32
    return %c0_i32, %c0_i32_0 : i32, i32
  }
  func.func @transform_2(%arg0: i32) -> (i32, i32) {
    %c0_i32 = arith.constant 0 : i32
    %c0_i32_0 = arith.constant 0 : i32
    %c0_i32_1 = arith.constant 0 : i32
    return %c0_i32, %c0_i32_0 : i32, i32
  }
  func.func @transform_3(%arg0: i32) -> (i32, i32) {
    %c0_i32 = arith.constant 0 : i32
    %c0_i32_0 = arith.constant 0 : i32
    return %arg0, %c0_i32 : i32, i32
  }
}

module attributes {stable_mosaic.version = 11 : i64} {
  func.func @_kan_kernel(%arg0: i32, %arg1: memref<32x32xf32, #tpu.memory_space<vmem>>, %arg2: memref<288x128xbf16, #tpu.memory_space<vmem>>, %arg3: memref<1x128xf32, #tpu.memory_space<vmem>>, %arg4: memref<1x128xf32, #tpu.memory_space<vmem>>, %arg5: memref<32x128xf32, #tpu.memory_space<vmem>>) attributes {dimension_semantics = [#tpu.dimension_semantics<parallel>], iteration_bounds = array<i64: 2>, scalar_prefetch = 0 : i64, scratch_operands = 0 : i64, tpu.core_type = #tpu.core_type<tc>, window_params = [{transform_indices = @transform_0, window_bounds = array<i64: 32, 32>}, {pipeline_mode = #tpu.pipeline_mode<synchronous>, transform_indices = @transform_1, window_bounds = array<i64: 288, 128>}, {pipeline_mode = #tpu.pipeline_mode<synchronous>, transform_indices = @transform_2, window_bounds = array<i64: 1, 128>}, {pipeline_mode = #tpu.pipeline_mode<synchronous>, transform_indices = @transform_3, window_bounds = array<i64: 1, 128>}, {transform_indices = @transform_4, window_bounds = array<i64: 32, 128>}]} {
    %c0 = arith.constant 0 : index
    %c0_0 = arith.constant 0 : index
    %0 = vector.load %arg1[%c0, %c0_0] : memref<32x32xf32, #tpu.memory_space<vmem>>, vector<32x32xf32>
    %c0_1 = arith.constant 0 : index
    %c0_2 = arith.constant 0 : index
    %1 = vector.load %arg2[%c0_1, %c0_2] : memref<288x128xbf16, #tpu.memory_space<vmem>>, vector<288x128xbf16>
    %c0_3 = arith.constant 0 : index
    %c0_4 = arith.constant 0 : index
    %2 = vector.load %arg3[%c0_3, %c0_4] : memref<1x128xf32, #tpu.memory_space<vmem>>, vector<1x128xf32>
    %c0_5 = arith.constant 0 : index
    %c0_6 = arith.constant 0 : index
    %3 = vector.load %arg4[%c0_5, %c0_6] : memref<1x128xf32, #tpu.memory_space<vmem>>, vector<1x128xf32>
    %cst = arith.constant -2.200000e+00 : f32
    %4 = vector.broadcast %cst : f32 to vector<32x32xf32>
    %5 = arith.cmpf oge, %0, %4 : vector<32x32xf32>
    %cst_7 = arith.constant -1.800000e+00 : f32
    %6 = vector.broadcast %cst_7 : f32 to vector<32x32xf32>
    %7 = arith.cmpf olt, %0, %6 : vector<32x32xf32>
    %8 = arith.andi %5, %7 : vector<32x32xi1>
    %9 = arith.extui %8 : vector<32x32xi1> to vector<32x32xi32>
    %10 = arith.sitofp %9 : vector<32x32xi32> to vector<32x32xf32>
    %cst_8 = arith.constant -1.800000e+00 : f32
    %11 = vector.broadcast %cst_8 : f32 to vector<32x32xf32>
    %12 = arith.cmpf oge, %0, %11 : vector<32x32xf32>
    %cst_9 = arith.constant -1.400000e+00 : f32
    %13 = vector.broadcast %cst_9 : f32 to vector<32x32xf32>
    %14 = arith.cmpf olt, %0, %13 : vector<32x32xf32>
    %15 = arith.andi %12, %14 : vector<32x32xi1>
    %16 = arith.extui %15 : vector<32x32xi1> to vector<32x32xi32>
    %17 = arith.sitofp %16 : vector<32x32xi32> to vector<32x32xf32>
    %cst_10 = arith.constant -1.400000e+00 : f32
    %18 = vector.broadcast %cst_10 : f32 to vector<32x32xf32>
    %19 = arith.cmpf oge, %0, %18 : vector<32x32xf32>
    %cst_11 = arith.constant -1.000000e+00 : f32
    %20 = vector.broadcast %cst_11 : f32 to vector<32x32xf32>
    %21 = arith.cmpf olt, %0, %20 : vector<32x32xf32>
    %22 = arith.andi %19, %21 : vector<32x32xi1>
    %23 = arith.extui %22 : vector<32x32xi1> to vector<32x32xi32>
    %24 = arith.sitofp %23 : vector<32x32xi32> to vector<32x32xf32>
    %cst_12 = arith.constant -1.000000e+00 : f32
    %25 = vector.broadcast %cst_12 : f32 to vector<32x32xf32>
    %26 = arith.cmpf oge, %0, %25 : vector<32x32xf32>
    %cst_13 = arith.constant -6.000000e-01 : f32
    %27 = vector.broadcast %cst_13 : f32 to vector<32x32xf32>
    %28 = arith.cmpf olt, %0, %27 : vector<32x32xf32>
    %29 = arith.andi %26, %28 : vector<32x32xi1>
    %30 = arith.extui %29 : vector<32x32xi1> to vector<32x32xi32>
    %31 = arith.sitofp %30 : vector<32x32xi32> to vector<32x32xf32>
    %cst_14 = arith.constant -6.000000e-01 : f32
    %32 = vector.broadcast %cst_14 : f32 to vector<32x32xf32>
    %33 = arith.cmpf oge, %0, %32 : vector<32x32xf32>
    %cst_15 = arith.constant -2.000000e-01 : f32
    %34 = vector.broadcast %cst_15 : f32 to vector<32x32xf32>
    %35 = arith.cmpf olt, %0, %34 : vector<32x32xf32>
    %36 = arith.andi %33, %35 : vector<32x32xi1>
    %37 = arith.extui %36 : vector<32x32xi1> to vector<32x32xi32>
    %38 = arith.sitofp %37 : vector<32x32xi32> to vector<32x32xf32>
    %cst_16 = arith.constant -2.000000e-01 : f32
    %39 = vector.broadcast %cst_16 : f32 to vector<32x32xf32>
    %40 = arith.cmpf oge, %0, %39 : vector<32x32xf32>
    %cst_17 = arith.constant 2.000000e-01 : f32
    %41 = vector.broadcast %cst_17 : f32 to vector<32x32xf32>
    %42 = arith.cmpf olt, %0, %41 : vector<32x32xf32>
    %43 = arith.andi %40, %42 : vector<32x32xi1>
    %44 = arith.extui %43 : vector<32x32xi1> to vector<32x32xi32>
    %45 = arith.sitofp %44 : vector<32x32xi32> to vector<32x32xf32>
    %cst_18 = arith.constant 2.000000e-01 : f32
    %46 = vector.broadcast %cst_18 : f32 to vector<32x32xf32>
    %47 = arith.cmpf oge, %0, %46 : vector<32x32xf32>
    %cst_19 = arith.constant 6.000000e-01 : f32
    %48 = vector.broadcast %cst_19 : f32 to vector<32x32xf32>
    %49 = arith.cmpf olt, %0, %48 : vector<32x32xf32>
    %50 = arith.andi %47, %49 : vector<32x32xi1>
    %51 = arith.extui %50 : vector<32x32xi1> to vector<32x32xi32>
    %52 = arith.sitofp %51 : vector<32x32xi32> to vector<32x32xf32>
    %cst_20 = arith.constant 6.000000e-01 : f32
    %53 = vector.broadcast %cst_20 : f32 to vector<32x32xf32>
    %54 = arith.cmpf oge, %0, %53 : vector<32x32xf32>
    %cst_21 = arith.constant 1.000000e+00 : f32
    %55 = vector.broadcast %cst_21 : f32 to vector<32x32xf32>
    %56 = arith.cmpf olt, %0, %55 : vector<32x32xf32>
    %57 = arith.andi %54, %56 : vector<32x32xi1>
    %58 = arith.extui %57 : vector<32x32xi1> to vector<32x32xi32>
    %59 = arith.sitofp %58 : vector<32x32xi32> to vector<32x32xf32>
    %cst_22 = arith.constant 1.000000e+00 : f32
    %60 = vector.broadcast %cst_22 : f32 to vector<32x32xf32>
    %61 = arith.cmpf oge, %0, %60 : vector<32x32xf32>
    %cst_23 = arith.constant 1.400000e+00 : f32
    %62 = vector.broadcast %cst_23 : f32 to vector<32x32xf32>
    %63 = arith.cmpf olt, %0, %62 : vector<32x32xf32>
    %64 = arith.andi %61, %63 : vector<32x32xi1>
    %65 = arith.extui %64 : vector<32x32xi1> to vector<32x32xi32>
    %66 = arith.sitofp %65 : vector<32x32xi32> to vector<32x32xf32>
    %cst_24 = arith.constant 1.400000e+00 : f32
    %67 = vector.broadcast %cst_24 : f32 to vector<32x32xf32>
    %68 = arith.cmpf oge, %0, %67 : vector<32x32xf32>
    %cst_25 = arith.constant 1.800000e+00 : f32
    %69 = vector.broadcast %cst_25 : f32 to vector<32x32xf32>
    %70 = arith.cmpf olt, %0, %69 : vector<32x32xf32>
    %71 = arith.andi %68, %70 : vector<32x32xi1>
    %72 = arith.extui %71 : vector<32x32xi1> to vector<32x32xi32>
    %73 = arith.sitofp %72 : vector<32x32xi32> to vector<32x32xf32>
    %cst_26 = arith.constant 1.800000e+00 : f32
    %74 = vector.broadcast %cst_26 : f32 to vector<32x32xf32>
    %75 = arith.cmpf oge, %0, %74 : vector<32x32xf32>
    %cst_27 = arith.constant 2.200000e+00 : f32
    %76 = vector.broadcast %cst_27 : f32 to vector<32x32xf32>
    %77 = arith.cmpf olt, %0, %76 : vector<32x32xf32>
    %78 = arith.andi %75, %77 : vector<32x32xi1>
    %79 = arith.extui %78 : vector<32x32xi1> to vector<32x32xi32>
    %80 = arith.sitofp %79 : vector<32x32xi32> to vector<32x32xf32>
    %cst_28 = arith.constant -2.200000e+00 : f32
    %81 = vector.broadcast %cst_28 : f32 to vector<32x32xf32>
    %82 = arith.subf %0, %81 : vector<32x32xf32>
    %cst_29 = arith.constant 2.500000e+00 : f32
    %83 = vector.broadcast %cst_29 : f32 to vector<32x32xf32>
    %84 = arith.mulf %82, %83 : vector<32x32xf32>
    %85 = arith.mulf %84, %10 : vector<32x32xf32>
    %cst_30 = arith.constant -1.400000e+00 : f32
    %86 = vector.broadcast %cst_30 : f32 to vector<32x32xf32>
    %87 = arith.subf %86, %0 : vector<32x32xf32>
    %cst_31 = arith.constant 2.500000e+00 : f32
    %88 = vector.broadcast %cst_31 : f32 to vector<32x32xf32>
    %89 = arith.mulf %87, %88 : vector<32x32xf32>
    %90 = arith.mulf %89, %17 : vector<32x32xf32>
    %91 = arith.addf %85, %90 : vector<32x32xf32>
    %cst_32 = arith.constant -1.800000e+00 : f32
    %92 = vector.broadcast %cst_32 : f32 to vector<32x32xf32>
    %93 = arith.subf %0, %92 : vector<32x32xf32>
    %cst_33 = arith.constant 2.500000e+00 : f32
    %94 = vector.broadcast %cst_33 : f32 to vector<32x32xf32>
    %95 = arith.mulf %93, %94 : vector<32x32xf32>
    %96 = arith.mulf %95, %17 : vector<32x32xf32>
    %cst_34 = arith.constant -1.000000e+00 : f32
    %97 = vector.broadcast %cst_34 : f32 to vector<32x32xf32>
    %98 = arith.subf %97, %0 : vector<32x32xf32>
    %cst_35 = arith.constant 2.500000e+00 : f32
    %99 = vector.broadcast %cst_35 : f32 to vector<32x32xf32>
    %100 = arith.mulf %98, %99 : vector<32x32xf32>
    %101 = arith.mulf %100, %24 : vector<32x32xf32>
    %102 = arith.addf %96, %101 : vector<32x32xf32>
    %cst_36 = arith.constant -1.400000e+00 : f32
    %103 = vector.broadcast %cst_36 : f32 to vector<32x32xf32>
    %104 = arith.subf %0, %103 : vector<32x32xf32>
    %cst_37 = arith.constant 2.500000e+00 : f32
    %105 = vector.broadcast %cst_37 : f32 to vector<32x32xf32>
    %106 = arith.mulf %104, %105 : vector<32x32xf32>
    %107 = arith.mulf %106, %24 : vector<32x32xf32>
    %cst_38 = arith.constant -6.000000e-01 : f32
    %108 = vector.broadcast %cst_38 : f32 to vector<32x32xf32>
    %109 = arith.subf %108, %0 : vector<32x32xf32>
    %cst_39 = arith.constant 2.500000e+00 : f32
    %110 = vector.broadcast %cst_39 : f32 to vector<32x32xf32>
    %111 = arith.mulf %109, %110 : vector<32x32xf32>
    %112 = arith.mulf %111, %31 : vector<32x32xf32>
    %113 = arith.addf %107, %112 : vector<32x32xf32>
    %cst_40 = arith.constant -1.000000e+00 : f32
    %114 = vector.broadcast %cst_40 : f32 to vector<32x32xf32>
    %115 = arith.subf %0, %114 : vector<32x32xf32>
    %cst_41 = arith.constant 2.500000e+00 : f32
    %116 = vector.broadcast %cst_41 : f32 to vector<32x32xf32>
    %117 = arith.mulf %115, %116 : vector<32x32xf32>
    %118 = arith.mulf %117, %31 : vector<32x32xf32>
    %cst_42 = arith.constant -2.000000e-01 : f32
    %119 = vector.broadcast %cst_42 : f32 to vector<32x32xf32>
    %120 = arith.subf %119, %0 : vector<32x32xf32>
    %cst_43 = arith.constant 2.500000e+00 : f32
    %121 = vector.broadcast %cst_43 : f32 to vector<32x32xf32>
    %122 = arith.mulf %120, %121 : vector<32x32xf32>
    %123 = arith.mulf %122, %38 : vector<32x32xf32>
    %124 = arith.addf %118, %123 : vector<32x32xf32>
    %cst_44 = arith.constant -6.000000e-01 : f32
    %125 = vector.broadcast %cst_44 : f32 to vector<32x32xf32>
    %126 = arith.subf %0, %125 : vector<32x32xf32>
    %cst_45 = arith.constant 2.500000e+00 : f32
    %127 = vector.broadcast %cst_45 : f32 to vector<32x32xf32>
    %128 = arith.mulf %126, %127 : vector<32x32xf32>
    %129 = arith.mulf %128, %38 : vector<32x32xf32>
    %cst_46 = arith.constant 2.000000e-01 : f32
    %130 = vector.broadcast %cst_46 : f32 to vector<32x32xf32>
    %131 = arith.subf %130, %0 : vector<32x32xf32>
    %cst_47 = arith.constant 2.500000e+00 : f32
    %132 = vector.broadcast %cst_47 : f32 to vector<32x32xf32>
    %133 = arith.mulf %131, %132 : vector<32x32xf32>
    %134 = arith.mulf %133, %45 : vector<32x32xf32>
    %135 = arith.addf %129, %134 : vector<32x32xf32>
    %cst_48 = arith.constant -2.000000e-01 : f32
    %136 = vector.broadcast %cst_48 : f32 to vector<32x32xf32>
    %137 = arith.subf %0, %136 : vector<32x32xf32>
    %cst_49 = arith.constant 2.500000e+00 : f32
    %138 = vector.broadcast %cst_49 : f32 to vector<32x32xf32>
    %139 = arith.mulf %137, %138 : vector<32x32xf32>
    %140 = arith.mulf %139, %45 : vector<32x32xf32>
    %cst_50 = arith.constant 6.000000e-01 : f32
    %141 = vector.broadcast %cst_50 : f32 to vector<32x32xf32>
    %142 = arith.subf %141, %0 : vector<32x32xf32>
    %cst_51 = arith.constant 2.500000e+00 : f32
    %143 = vector.broadcast %cst_51 : f32 to vector<32x32xf32>
    %144 = arith.mulf %142, %143 : vector<32x32xf32>
    %145 = arith.mulf %144, %52 : vector<32x32xf32>
    %146 = arith.addf %140, %145 : vector<32x32xf32>
    %cst_52 = arith.constant 2.000000e-01 : f32
    %147 = vector.broadcast %cst_52 : f32 to vector<32x32xf32>
    %148 = arith.subf %0, %147 : vector<32x32xf32>
    %cst_53 = arith.constant 2.500000e+00 : f32
    %149 = vector.broadcast %cst_53 : f32 to vector<32x32xf32>
    %150 = arith.mulf %148, %149 : vector<32x32xf32>
    %151 = arith.mulf %150, %52 : vector<32x32xf32>
    %cst_54 = arith.constant 1.000000e+00 : f32
    %152 = vector.broadcast %cst_54 : f32 to vector<32x32xf32>
    %153 = arith.subf %152, %0 : vector<32x32xf32>
    %cst_55 = arith.constant 2.500000e+00 : f32
    %154 = vector.broadcast %cst_55 : f32 to vector<32x32xf32>
    %155 = arith.mulf %153, %154 : vector<32x32xf32>
    %156 = arith.mulf %155, %59 : vector<32x32xf32>
    %157 = arith.addf %151, %156 : vector<32x32xf32>
    %cst_56 = arith.constant 6.000000e-01 : f32
    %158 = vector.broadcast %cst_56 : f32 to vector<32x32xf32>
    %159 = arith.subf %0, %158 : vector<32x32xf32>
    %cst_57 = arith.constant 2.500000e+00 : f32
    %160 = vector.broadcast %cst_57 : f32 to vector<32x32xf32>
    %161 = arith.mulf %159, %160 : vector<32x32xf32>
    %162 = arith.mulf %161, %59 : vector<32x32xf32>
    %cst_58 = arith.constant 1.400000e+00 : f32
    %163 = vector.broadcast %cst_58 : f32 to vector<32x32xf32>
    %164 = arith.subf %163, %0 : vector<32x32xf32>
    %cst_59 = arith.constant 2.500000e+00 : f32
    %165 = vector.broadcast %cst_59 : f32 to vector<32x32xf32>
    %166 = arith.mulf %164, %165 : vector<32x32xf32>
    %167 = arith.mulf %166, %66 : vector<32x32xf32>
    %168 = arith.addf %162, %167 : vector<32x32xf32>
    %cst_60 = arith.constant 1.000000e+00 : f32
    %169 = vector.broadcast %cst_60 : f32 to vector<32x32xf32>
    %170 = arith.subf %0, %169 : vector<32x32xf32>
    %cst_61 = arith.constant 2.500000e+00 : f32
    %171 = vector.broadcast %cst_61 : f32 to vector<32x32xf32>
    %172 = arith.mulf %170, %171 : vector<32x32xf32>
    %173 = arith.mulf %172, %66 : vector<32x32xf32>
    %cst_62 = arith.constant 1.800000e+00 : f32
    %174 = vector.broadcast %cst_62 : f32 to vector<32x32xf32>
    %175 = arith.subf %174, %0 : vector<32x32xf32>
    %cst_63 = arith.constant 2.500000e+00 : f32
    %176 = vector.broadcast %cst_63 : f32 to vector<32x32xf32>
    %177 = arith.mulf %175, %176 : vector<32x32xf32>
    %178 = arith.mulf %177, %73 : vector<32x32xf32>
    %179 = arith.addf %173, %178 : vector<32x32xf32>
    %cst_64 = arith.constant 1.400000e+00 : f32
    %180 = vector.broadcast %cst_64 : f32 to vector<32x32xf32>
    %181 = arith.subf %0, %180 : vector<32x32xf32>
    %cst_65 = arith.constant 2.500000e+00 : f32
    %182 = vector.broadcast %cst_65 : f32 to vector<32x32xf32>
    %183 = arith.mulf %181, %182 : vector<32x32xf32>
    %184 = arith.mulf %183, %73 : vector<32x32xf32>
    %cst_66 = arith.constant 2.200000e+00 : f32
    %185 = vector.broadcast %cst_66 : f32 to vector<32x32xf32>
    %186 = arith.subf %185, %0 : vector<32x32xf32>
    %cst_67 = arith.constant 2.500000e+00 : f32
    %187 = vector.broadcast %cst_67 : f32 to vector<32x32xf32>
    %188 = arith.mulf %186, %187 : vector<32x32xf32>
    %189 = arith.mulf %188, %80 : vector<32x32xf32>
    %190 = arith.addf %184, %189 : vector<32x32xf32>
    %cst_68 = arith.constant -2.200000e+00 : f32
    %191 = vector.broadcast %cst_68 : f32 to vector<32x32xf32>
    %192 = arith.subf %0, %191 : vector<32x32xf32>
    %cst_69 = arith.constant 1.250000e+00 : f32
    %193 = vector.broadcast %cst_69 : f32 to vector<32x32xf32>
    %194 = arith.mulf %192, %193 : vector<32x32xf32>
    %195 = arith.mulf %194, %91 : vector<32x32xf32>
    %cst_70 = arith.constant -1.000000e+00 : f32
    %196 = vector.broadcast %cst_70 : f32 to vector<32x32xf32>
    %197 = arith.subf %196, %0 : vector<32x32xf32>
    %cst_71 = arith.constant 1.250000e+00 : f32
    %198 = vector.broadcast %cst_71 : f32 to vector<32x32xf32>
    %199 = arith.mulf %197, %198 : vector<32x32xf32>
    %200 = arith.mulf %199, %102 : vector<32x32xf32>
    %201 = arith.addf %195, %200 : vector<32x32xf32>
    %cst_72 = arith.constant -1.800000e+00 : f32
    %202 = vector.broadcast %cst_72 : f32 to vector<32x32xf32>
    %203 = arith.subf %0, %202 : vector<32x32xf32>
    %cst_73 = arith.constant 1.250000e+00 : f32
    %204 = vector.broadcast %cst_73 : f32 to vector<32x32xf32>
    %205 = arith.mulf %203, %204 : vector<32x32xf32>
    %206 = arith.mulf %205, %102 : vector<32x32xf32>
    %cst_74 = arith.constant -6.000000e-01 : f32
    %207 = vector.broadcast %cst_74 : f32 to vector<32x32xf32>
    %208 = arith.subf %207, %0 : vector<32x32xf32>
    %cst_75 = arith.constant 1.250000e+00 : f32
    %209 = vector.broadcast %cst_75 : f32 to vector<32x32xf32>
    %210 = arith.mulf %208, %209 : vector<32x32xf32>
    %211 = arith.mulf %210, %113 : vector<32x32xf32>
    %212 = arith.addf %206, %211 : vector<32x32xf32>
    %cst_76 = arith.constant -1.400000e+00 : f32
    %213 = vector.broadcast %cst_76 : f32 to vector<32x32xf32>
    %214 = arith.subf %0, %213 : vector<32x32xf32>
    %cst_77 = arith.constant 1.250000e+00 : f32
    %215 = vector.broadcast %cst_77 : f32 to vector<32x32xf32>
    %216 = arith.mulf %214, %215 : vector<32x32xf32>
    %217 = arith.mulf %216, %113 : vector<32x32xf32>
    %cst_78 = arith.constant -2.000000e-01 : f32
    %218 = vector.broadcast %cst_78 : f32 to vector<32x32xf32>
    %219 = arith.subf %218, %0 : vector<32x32xf32>
    %cst_79 = arith.constant 1.250000e+00 : f32
    %220 = vector.broadcast %cst_79 : f32 to vector<32x32xf32>
    %221 = arith.mulf %219, %220 : vector<32x32xf32>
    %222 = arith.mulf %221, %124 : vector<32x32xf32>
    %223 = arith.addf %217, %222 : vector<32x32xf32>
    %cst_80 = arith.constant -1.000000e+00 : f32
    %224 = vector.broadcast %cst_80 : f32 to vector<32x32xf32>
    %225 = arith.subf %0, %224 : vector<32x32xf32>
    %cst_81 = arith.constant 1.250000e+00 : f32
    %226 = vector.broadcast %cst_81 : f32 to vector<32x32xf32>
    %227 = arith.mulf %225, %226 : vector<32x32xf32>
    %228 = arith.mulf %227, %124 : vector<32x32xf32>
    %cst_82 = arith.constant 2.000000e-01 : f32
    %229 = vector.broadcast %cst_82 : f32 to vector<32x32xf32>
    %230 = arith.subf %229, %0 : vector<32x32xf32>
    %cst_83 = arith.constant 1.250000e+00 : f32
    %231 = vector.broadcast %cst_83 : f32 to vector<32x32xf32>
    %232 = arith.mulf %230, %231 : vector<32x32xf32>
    %233 = arith.mulf %232, %135 : vector<32x32xf32>
    %234 = arith.addf %228, %233 : vector<32x32xf32>
    %cst_84 = arith.constant -6.000000e-01 : f32
    %235 = vector.broadcast %cst_84 : f32 to vector<32x32xf32>
    %236 = arith.subf %0, %235 : vector<32x32xf32>
    %cst_85 = arith.constant 1.250000e+00 : f32
    %237 = vector.broadcast %cst_85 : f32 to vector<32x32xf32>
    %238 = arith.mulf %236, %237 : vector<32x32xf32>
    %239 = arith.mulf %238, %135 : vector<32x32xf32>
    %cst_86 = arith.constant 6.000000e-01 : f32
    %240 = vector.broadcast %cst_86 : f32 to vector<32x32xf32>
    %241 = arith.subf %240, %0 : vector<32x32xf32>
    %cst_87 = arith.constant 1.250000e+00 : f32
    %242 = vector.broadcast %cst_87 : f32 to vector<32x32xf32>
    %243 = arith.mulf %241, %242 : vector<32x32xf32>
    %244 = arith.mulf %243, %146 : vector<32x32xf32>
    %245 = arith.addf %239, %244 : vector<32x32xf32>
    %cst_88 = arith.constant -2.000000e-01 : f32
    %246 = vector.broadcast %cst_88 : f32 to vector<32x32xf32>
    %247 = arith.subf %0, %246 : vector<32x32xf32>
    %cst_89 = arith.constant 1.250000e+00 : f32
    %248 = vector.broadcast %cst_89 : f32 to vector<32x32xf32>
    %249 = arith.mulf %247, %248 : vector<32x32xf32>
    %250 = arith.mulf %249, %146 : vector<32x32xf32>
    %cst_90 = arith.constant 1.000000e+00 : f32
    %251 = vector.broadcast %cst_90 : f32 to vector<32x32xf32>
    %252 = arith.subf %251, %0 : vector<32x32xf32>
    %cst_91 = arith.constant 1.250000e+00 : f32
    %253 = vector.broadcast %cst_91 : f32 to vector<32x32xf32>
    %254 = arith.mulf %252, %253 : vector<32x32xf32>
    %255 = arith.mulf %254, %157 : vector<32x32xf32>
    %256 = arith.addf %250, %255 : vector<32x32xf32>
    %cst_92 = arith.constant 2.000000e-01 : f32
    %257 = vector.broadcast %cst_92 : f32 to vector<32x32xf32>
    %258 = arith.subf %0, %257 : vector<32x32xf32>
    %cst_93 = arith.constant 1.250000e+00 : f32
    %259 = vector.broadcast %cst_93 : f32 to vector<32x32xf32>
    %260 = arith.mulf %258, %259 : vector<32x32xf32>
    %261 = arith.mulf %260, %157 : vector<32x32xf32>
    %cst_94 = arith.constant 1.400000e+00 : f32
    %262 = vector.broadcast %cst_94 : f32 to vector<32x32xf32>
    %263 = arith.subf %262, %0 : vector<32x32xf32>
    %cst_95 = arith.constant 1.250000e+00 : f32
    %264 = vector.broadcast %cst_95 : f32 to vector<32x32xf32>
    %265 = arith.mulf %263, %264 : vector<32x32xf32>
    %266 = arith.mulf %265, %168 : vector<32x32xf32>
    %267 = arith.addf %261, %266 : vector<32x32xf32>
    %cst_96 = arith.constant 6.000000e-01 : f32
    %268 = vector.broadcast %cst_96 : f32 to vector<32x32xf32>
    %269 = arith.subf %0, %268 : vector<32x32xf32>
    %cst_97 = arith.constant 1.250000e+00 : f32
    %270 = vector.broadcast %cst_97 : f32 to vector<32x32xf32>
    %271 = arith.mulf %269, %270 : vector<32x32xf32>
    %272 = arith.mulf %271, %168 : vector<32x32xf32>
    %cst_98 = arith.constant 1.800000e+00 : f32
    %273 = vector.broadcast %cst_98 : f32 to vector<32x32xf32>
    %274 = arith.subf %273, %0 : vector<32x32xf32>
    %cst_99 = arith.constant 1.250000e+00 : f32
    %275 = vector.broadcast %cst_99 : f32 to vector<32x32xf32>
    %276 = arith.mulf %274, %275 : vector<32x32xf32>
    %277 = arith.mulf %276, %179 : vector<32x32xf32>
    %278 = arith.addf %272, %277 : vector<32x32xf32>
    %cst_100 = arith.constant 1.000000e+00 : f32
    %279 = vector.broadcast %cst_100 : f32 to vector<32x32xf32>
    %280 = arith.subf %0, %279 : vector<32x32xf32>
    %cst_101 = arith.constant 1.250000e+00 : f32
    %281 = vector.broadcast %cst_101 : f32 to vector<32x32xf32>
    %282 = arith.mulf %280, %281 : vector<32x32xf32>
    %283 = arith.mulf %282, %179 : vector<32x32xf32>
    %cst_102 = arith.constant 2.200000e+00 : f32
    %284 = vector.broadcast %cst_102 : f32 to vector<32x32xf32>
    %285 = arith.subf %284, %0 : vector<32x32xf32>
    %cst_103 = arith.constant 1.250000e+00 : f32
    %286 = vector.broadcast %cst_103 : f32 to vector<32x32xf32>
    %287 = arith.mulf %285, %286 : vector<32x32xf32>
    %288 = arith.mulf %287, %190 : vector<32x32xf32>
    %289 = arith.addf %283, %288 : vector<32x32xf32>
    %cst_104 = arith.constant -2.200000e+00 : f32
    %290 = vector.broadcast %cst_104 : f32 to vector<32x32xf32>
    %291 = arith.subf %0, %290 : vector<32x32xf32>
    %cst_105 = arith.constant 0.833333313 : f32
    %292 = vector.broadcast %cst_105 : f32 to vector<32x32xf32>
    %293 = arith.mulf %291, %292 : vector<32x32xf32>
    %294 = arith.mulf %293, %201 : vector<32x32xf32>
    %cst_106 = arith.constant -6.000000e-01 : f32
    %295 = vector.broadcast %cst_106 : f32 to vector<32x32xf32>
    %296 = arith.subf %295, %0 : vector<32x32xf32>
    %cst_107 = arith.constant 0.833333313 : f32
    %297 = vector.broadcast %cst_107 : f32 to vector<32x32xf32>
    %298 = arith.mulf %296, %297 : vector<32x32xf32>
    %299 = arith.mulf %298, %212 : vector<32x32xf32>
    %300 = arith.addf %294, %299 : vector<32x32xf32>
    %cst_108 = arith.constant -1.800000e+00 : f32
    %301 = vector.broadcast %cst_108 : f32 to vector<32x32xf32>
    %302 = arith.subf %0, %301 : vector<32x32xf32>
    %cst_109 = arith.constant 0.833333313 : f32
    %303 = vector.broadcast %cst_109 : f32 to vector<32x32xf32>
    %304 = arith.mulf %302, %303 : vector<32x32xf32>
    %305 = arith.mulf %304, %212 : vector<32x32xf32>
    %cst_110 = arith.constant -2.000000e-01 : f32
    %306 = vector.broadcast %cst_110 : f32 to vector<32x32xf32>
    %307 = arith.subf %306, %0 : vector<32x32xf32>
    %cst_111 = arith.constant 0.833333313 : f32
    %308 = vector.broadcast %cst_111 : f32 to vector<32x32xf32>
    %309 = arith.mulf %307, %308 : vector<32x32xf32>
    %310 = arith.mulf %309, %223 : vector<32x32xf32>
    %311 = arith.addf %305, %310 : vector<32x32xf32>
    %cst_112 = arith.constant -1.400000e+00 : f32
    %312 = vector.broadcast %cst_112 : f32 to vector<32x32xf32>
    %313 = arith.subf %0, %312 : vector<32x32xf32>
    %cst_113 = arith.constant 0.833333313 : f32
    %314 = vector.broadcast %cst_113 : f32 to vector<32x32xf32>
    %315 = arith.mulf %313, %314 : vector<32x32xf32>
    %316 = arith.mulf %315, %223 : vector<32x32xf32>
    %cst_114 = arith.constant 2.000000e-01 : f32
    %317 = vector.broadcast %cst_114 : f32 to vector<32x32xf32>
    %318 = arith.subf %317, %0 : vector<32x32xf32>
    %cst_115 = arith.constant 0.833333313 : f32
    %319 = vector.broadcast %cst_115 : f32 to vector<32x32xf32>
    %320 = arith.mulf %318, %319 : vector<32x32xf32>
    %321 = arith.mulf %320, %234 : vector<32x32xf32>
    %322 = arith.addf %316, %321 : vector<32x32xf32>
    %cst_116 = arith.constant -1.000000e+00 : f32
    %323 = vector.broadcast %cst_116 : f32 to vector<32x32xf32>
    %324 = arith.subf %0, %323 : vector<32x32xf32>
    %cst_117 = arith.constant 0.833333313 : f32
    %325 = vector.broadcast %cst_117 : f32 to vector<32x32xf32>
    %326 = arith.mulf %324, %325 : vector<32x32xf32>
    %327 = arith.mulf %326, %234 : vector<32x32xf32>
    %cst_118 = arith.constant 6.000000e-01 : f32
    %328 = vector.broadcast %cst_118 : f32 to vector<32x32xf32>
    %329 = arith.subf %328, %0 : vector<32x32xf32>
    %cst_119 = arith.constant 0.833333313 : f32
    %330 = vector.broadcast %cst_119 : f32 to vector<32x32xf32>
    %331 = arith.mulf %329, %330 : vector<32x32xf32>
    %332 = arith.mulf %331, %245 : vector<32x32xf32>
    %333 = arith.addf %327, %332 : vector<32x32xf32>
    %cst_120 = arith.constant -6.000000e-01 : f32
    %334 = vector.broadcast %cst_120 : f32 to vector<32x32xf32>
    %335 = arith.subf %0, %334 : vector<32x32xf32>
    %cst_121 = arith.constant 0.833333313 : f32
    %336 = vector.broadcast %cst_121 : f32 to vector<32x32xf32>
    %337 = arith.mulf %335, %336 : vector<32x32xf32>
    %338 = arith.mulf %337, %245 : vector<32x32xf32>
    %cst_122 = arith.constant 1.000000e+00 : f32
    %339 = vector.broadcast %cst_122 : f32 to vector<32x32xf32>
    %340 = arith.subf %339, %0 : vector<32x32xf32>
    %cst_123 = arith.constant 0.833333313 : f32
    %341 = vector.broadcast %cst_123 : f32 to vector<32x32xf32>
    %342 = arith.mulf %340, %341 : vector<32x32xf32>
    %343 = arith.mulf %342, %256 : vector<32x32xf32>
    %344 = arith.addf %338, %343 : vector<32x32xf32>
    %cst_124 = arith.constant -2.000000e-01 : f32
    %345 = vector.broadcast %cst_124 : f32 to vector<32x32xf32>
    %346 = arith.subf %0, %345 : vector<32x32xf32>
    %cst_125 = arith.constant 0.833333313 : f32
    %347 = vector.broadcast %cst_125 : f32 to vector<32x32xf32>
    %348 = arith.mulf %346, %347 : vector<32x32xf32>
    %349 = arith.mulf %348, %256 : vector<32x32xf32>
    %cst_126 = arith.constant 1.400000e+00 : f32
    %350 = vector.broadcast %cst_126 : f32 to vector<32x32xf32>
    %351 = arith.subf %350, %0 : vector<32x32xf32>
    %cst_127 = arith.constant 0.833333313 : f32
    %352 = vector.broadcast %cst_127 : f32 to vector<32x32xf32>
    %353 = arith.mulf %351, %352 : vector<32x32xf32>
    %354 = arith.mulf %353, %267 : vector<32x32xf32>
    %355 = arith.addf %349, %354 : vector<32x32xf32>
    %cst_128 = arith.constant 2.000000e-01 : f32
    %356 = vector.broadcast %cst_128 : f32 to vector<32x32xf32>
    %357 = arith.subf %0, %356 : vector<32x32xf32>
    %cst_129 = arith.constant 0.833333313 : f32
    %358 = vector.broadcast %cst_129 : f32 to vector<32x32xf32>
    %359 = arith.mulf %357, %358 : vector<32x32xf32>
    %360 = arith.mulf %359, %267 : vector<32x32xf32>
    %cst_130 = arith.constant 1.800000e+00 : f32
    %361 = vector.broadcast %cst_130 : f32 to vector<32x32xf32>
    %362 = arith.subf %361, %0 : vector<32x32xf32>
    %cst_131 = arith.constant 0.833333313 : f32
    %363 = vector.broadcast %cst_131 : f32 to vector<32x32xf32>
    %364 = arith.mulf %362, %363 : vector<32x32xf32>
    %365 = arith.mulf %364, %278 : vector<32x32xf32>
    %366 = arith.addf %360, %365 : vector<32x32xf32>
    %cst_132 = arith.constant 6.000000e-01 : f32
    %367 = vector.broadcast %cst_132 : f32 to vector<32x32xf32>
    %368 = arith.subf %0, %367 : vector<32x32xf32>
    %cst_133 = arith.constant 0.833333313 : f32
    %369 = vector.broadcast %cst_133 : f32 to vector<32x32xf32>
    %370 = arith.mulf %368, %369 : vector<32x32xf32>
    %371 = arith.mulf %370, %278 : vector<32x32xf32>
    %cst_134 = arith.constant 2.200000e+00 : f32
    %372 = vector.broadcast %cst_134 : f32 to vector<32x32xf32>
    %373 = arith.subf %372, %0 : vector<32x32xf32>
    %cst_135 = arith.constant 0.833333313 : f32
    %374 = vector.broadcast %cst_135 : f32 to vector<32x32xf32>
    %375 = arith.mulf %373, %374 : vector<32x32xf32>
    %376 = arith.mulf %375, %289 : vector<32x32xf32>
    %377 = arith.addf %371, %376 : vector<32x32xf32>
    %378 = arith.negf %0 : vector<32x32xf32>
    %379 = math.exp %378 : vector<32x32xf32>
    %cst_136 = arith.constant 1.000000e+00 : f32
    %380 = vector.broadcast %cst_136 : f32 to vector<32x32xf32>
    %381 = arith.addf %380, %379 : vector<32x32xf32>
    %382 = arith.divf %380, %381 : vector<32x32xf32>
    %383 = arith.mulf %0, %382 : vector<32x32xf32>
    %384 = tpu.concatenate %300, %311, %322, %333, %344, %355, %366, %377, %383 in 1 : vector<32x32xf32>, vector<32x32xf32>, vector<32x32xf32>, vector<32x32xf32>, vector<32x32xf32>, vector<32x32xf32>, vector<32x32xf32>, vector<32x32xf32>, vector<32x32xf32> -> vector<32x288xf32>
    %385 = arith.truncf %384 : vector<32x288xf32> to vector<32x288xbf16>
    %cst_137 = arith.constant dense<0.000000e+00> : vector<32x128xf32>
    %386 = tpu.matmul %385, %1, %cst_137 {dimension_numbers = #tpu.dot_dimension_numbers<[1], [0], [0], [1], [0, 0, 1, 1], [], []>} : vector<32x288xbf16>, vector<288x128xbf16>, vector<32x128xf32> -> vector<32x128xf32>
    %cst_138 = arith.constant dense<0.000000e+00> : vector<32xf32>
    %387 = vector.multi_reduction <add>, %386, %cst_138 [1] : vector<32x128xf32> to vector<32xf32>
    %388 = vector.shape_cast %387 : vector<32xf32> to vector<32x1xf32>
    %cst_139 = arith.constant 3.125000e-02 : f32
    %389 = vector.broadcast %cst_139 : f32 to vector<32x1xf32>
    %390 = arith.mulf %388, %389 : vector<32x1xf32>
    %391 = arith.mulf %386, %386 : vector<32x128xf32>
    %cst_140 = arith.constant dense<0.000000e+00> : vector<32xf32>
    %392 = vector.multi_reduction <add>, %391, %cst_140 [1] : vector<32x128xf32> to vector<32xf32>
    %393 = vector.shape_cast %392 : vector<32xf32> to vector<32x1xf32>
    %cst_141 = arith.constant 3.125000e-02 : f32
    %394 = vector.broadcast %cst_141 : f32 to vector<32x1xf32>
    %395 = arith.mulf %393, %394 : vector<32x1xf32>
    %396 = arith.mulf %390, %390 : vector<32x1xf32>
    %397 = arith.subf %395, %396 : vector<32x1xf32>
    %398 = vector.broadcast %390 : vector<32x1xf32> to vector<32x128xf32>
    %399 = arith.subf %386, %398 : vector<32x128xf32>
    %cst_142 = arith.constant 9.99999974E-6 : f32
    %400 = vector.broadcast %cst_142 : f32 to vector<32x1xf32>
    %401 = arith.addf %397, %400 : vector<32x1xf32>
    %402 = math.rsqrt %401 : vector<32x1xf32>
    %403 = vector.broadcast %402 : vector<32x1xf32> to vector<32x128xf32>
    %404 = arith.mulf %399, %403 : vector<32x128xf32>
    %405 = vector.broadcast %2 : vector<1x128xf32> to vector<32x128xf32>
    %406 = arith.mulf %404, %405 : vector<32x128xf32>
    %407 = vector.broadcast %3 : vector<1x128xf32> to vector<32x128xf32>
    %408 = arith.addf %406, %407 : vector<32x128xf32>
    %c0_143 = arith.constant 0 : index
    %c0_144 = arith.constant 0 : index
    %409 = vector.load %arg5[%c0_143, %c0_144] : memref<32x128xf32, #tpu.memory_space<vmem>>, vector<32x128xf32>
    tpu.vector_store %arg5[%c0_143, %c0_144], %408 {strides = array<i32>} : memref<32x128xf32, #tpu.memory_space<vmem>>, vector<32x128xf32>,
    return
  }
  func.func @transform_0(%arg0: i32) -> (i32, i32) {
    %c0_i32 = arith.constant 0 : i32
    %c0_i32_0 = arith.constant 0 : i32
    return %arg0, %c0_i32 : i32, i32
  }
  func.func @transform_1(%arg0: i32) -> (i32, i32) {
    %c0_i32 = arith.constant 0 : i32
    %c0_i32_0 = arith.constant 0 : i32
    %c0_i32_1 = arith.constant 0 : i32
    return %c0_i32, %c0_i32_0 : i32, i32
  }
  func.func @transform_2(%arg0: i32) -> (i32, i32) {
    %c0_i32 = arith.constant 0 : i32
    %c0_i32_0 = arith.constant 0 : i32
    %c0_i32_1 = arith.constant 0 : i32
    return %c0_i32, %c0_i32_0 : i32, i32
  }
  func.func @transform_3(%arg0: i32) -> (i32, i32) {
    %c0_i32 = arith.constant 0 : i32
    %c0_i32_0 = arith.constant 0 : i32
    %c0_i32_1 = arith.constant 0 : i32
    return %c0_i32, %c0_i32_0 : i32, i32
  }
  func.func @transform_4(%arg0: i32) -> (i32, i32) {
    %c0_i32 = arith.constant 0 : i32
    %c0_i32_0 = arith.constant 0 : i32
    return %arg0, %c0_i32 : i32, i32
  }
}

</mosaic_0001>

<bundles_post_ra>
// kernel: forward.5
= control target key start
LH: loop header
LB: loop body
LE: loop exit
PB: predicated region body
PF: predicated region fallthrough
CT: control target
= control target key end

     0   :  { %s349_s12 = smov 0   ;;  %s375_s0 = inlined_call_operand.vmem [shape: f32[64,32], index: 0, kind: input, shape index: {}]   ;;  %s376_s1 = inlined_call_operand.vmem [shape: bf16[32,128], index: 1, kind: input, shape index: {}]   ;;  %s377_s2 = inlined_call_operand.vmem [shape: f32[1,128], index: 2, kind: input, shape index: {}]   ;;  %s378_s3 = inlined_call_operand.vmem [shape: f32[64,128], index: 3, kind: output, shape index: {}]  }
   0x1 LB: > { %s287_s13 = sadd.s32 4294967295, %s327_s12   ;;  %p291_p0 = scmp.ge.s32.totalorder %s327_s12, 1  ;;  %s327_s12 = sphi %s349_s12, %s13_s12  }
   0x2   : > { %p138_p1 = scmp.lt.s32.totalorder %s327_s12, 3 }
   0x4   : > { %p139_p2 = pnand %p291_p0, %p138_p1 }
   0x5   : > { %s292_s16 = sshll.u32 (!%p139_p2), %s287_s13, 2 }
   0x6   : > { %142 = sbr.rel (%p139_p2) target bundleno = 157 (0x9d), region = 32  ;;  %p163_p3 = scmp.lt.s32.totalorder (!%p139_p2), %s292_s16, 7 }
   0xb   : > { %v309_v0 = vld [vmem:[%s376_s1 + $0x8] sm:$0xff]  ;;  %v308_v1 = vld [vmem:[%s376_s1] sm:$0xff]  ;;  %s380_s16 = smov (!%p163_p3, %s292_s16), 7  ;;  %vm201_vm0 = vcmask 261120  }
   0xc   : > { %214 = vmatpush.bf16.msra.mxu0 %v309_v0  ;;  %310 = vmatpush.bf16.msra.mxu1 %v309_v0  ;;  %s293_s19 = sshll.u32 %s380_s16, 3  ;;  %v320_v8 = vld [vmem:[%s377_s2] ss:$0 sm:$0xff] }
   0xd   : > { %s166_s22 = scalar_lea.vmem %s375_s0, %s293_s19  ;;  %s172_s27 = scalar_lea.vmem %s378_s3, %s293_s19 }
   0xe   : > { %v175_v2 = vld [vmem:[%s166_s22] sm:$0xff]  ;;  %v176_v3 = vld [vmem:[%s166_s22 + $0x8] sm:$0xff]  ;;  %v177_v4 = vld [vmem:[%s166_s22 + $0x10] sm:$0xff] }
   0xf   : > { %v184_v5 = vpack.c.bf16 %v176_v3, %v175_v2  ;;  %v178_v6 = vld [vmem:[%s166_s22 + $0x18] sm:$0xff] }
  0x10   : > { %215 = vmatpush.bf16.msra.mxu0 %v308_v1  ;;  %311 = vmatpush.bf16.msra.mxu1 %v308_v1  ;;  %v185_v7 = vpack.c.bf16 %v178_v6, %v177_v4 }
  0x13   : > { %304 = vmatmul.msk.bf16.vlgmr.msra.gmra.mxu0 %vm201_vm0, %v184_v5  ;;  %305 = vmatmul.msk.bf16.vlgmr.msra.gmra.mxu1 %vm201_vm0, %v185_v7 }
  0x90   : > { %v217_v9 = vpop.f32.mrf.mxu0  ;;  %v222_v11 = vpop.f32.mrf.mxu1 }
  0x91   : > { %v218_v10 = vadd.f32 %v320_v8, %v217_v9  ;;  %v223_v15 = vadd.f32 %v320_v8, %v222_v11 }
  0x93   : > { %227 = vst [vmem:[%s172_s27] sm:$0xff] %v218_v10 }
  0x94   : > { %229 = vst [vmem:[%s172_s27 + $0x10] sm:$0xff] %v223_v15 }
  0x98   : > { %v219_v12 = vpop.f32.mrf.mxu0  ;;  %v224_v14 = vpop.f32.mrf.mxu1 }
  0x99   : > { %v220_v13 = vadd.f32 %v320_v8, %v219_v12  ;;  %v225_v16 = vadd.f32 %v320_v8, %v224_v14 }
  0x9b   : > { %228 = vst [vmem:[%s172_s27 + $0x8] sm:$0xff] %v220_v13 }
  0x9c   : > { %230 = vst [vmem:[%s172_s27 + $0x18] sm:$0xff] %v225_v16 }
  0x9d PF: > { %s13_s12 = sadd.s32 1, %s327_s12  }
  0x9e   : > { %p10_p4 = scmp.ge.s32.totalorder %s13_s12, 4  }
  0xa0   :  { %12 = sbr.rel (!%p10_p4) target bundleno = 1 (0x1), region = 62 }

// kernel: forward.3
= control target key start
LH: loop header
LB: loop body
LE: loop exit
PB: predicated region body
PF: predicated region fallthrough
CT: control target
= control target key end

     0   :  { %9 = vsyncpa [#allocation3], 0  ;;  %s2045_s15 = smov 0   ;;  %s2853_s0 = inlined_call_operand.vmem [shape: f32[64,32], index: 0, kind: input, shape index: {}]   ;;  %s2854_s1 = inlined_call_operand.hbm [shape: bf16[288,128], index: 1, kind: input, shape index: {}]   ;;  %s2855_s2 = inlined_call_operand.vmem [shape: f32[1,128], index: 2, kind: input, shape index: {}]   ;;  %s2856_s3 = inlined_call_operand.vmem [shape: f32[1,128], index: 3, kind: input, shape index: {}]   ;;  %s2857_s4 = inlined_call_operand.vmem [shape: f32[64,128], index: 4, kind: output, shape index: {}]  }
   0x1 LB: > { %s146_s18 = sshll.u32 %s2854_s1, 4  ;;  %s1655_s19 = sadd.s32 4294967295, %s2011_s15   ;;  %s2011_s15 = sphi %s2045_s15, %s15_s15   ;;  %s147_s18 = int_to_ptr.hbm [resolvable:$true] %s146_s18 }
   0x2   : > { %p1657_p0 = scmp.ge.s32.totalorder %s2011_s15, 1  ;;  %p135_p1 = scmp.lt.s32.totalorder %s2011_s15, 3 }
   0x3   : > { %p1864_p2 = scmp.eq.s32.totalorder %s1655_s19, 0  ;;  %s2013_s20 = smov [#allocation2]  }
   0x4   : > { %p136_p3 = pnand %p1657_p0, %p135_p1  ;;  %s148_s21 = sshll.u32 %s2013_s20, 4  ;;  %s149_s21 = int_to_ptr.vmem [resolvable:$true] %s148_s21 }
   0x5   : > { %s2014_s22 = smov 64   ;;  %s2015_s23 = smov 4  }
   0x6   : > { %p1860_p4 = pneg %p136_p3  ;;  %179 = sbr.rel (%p136_p3) target bundleno = 593 (0x251), region = 36 }
   0x8   : > { %p1861_p5 = pnand %p1864_p2, %p1860_p4 }
   0xa   : > { %1863 = dma.hbm_to_vmem [thread:$0]  (!%p1861_p5), %s147_s18, 2304, %s149_s21, [#allocation3], %s2014_s22, %s2014_s22, %s2015_s23  }
   0xb   : > { %2006 = dma.done.wait (%p1864_p2), [#allocation3], 2304  }
   0xc   : > { %2008 = vsyncadd (%p1864_p2), [#allocation3], 4294964992  ;;  %s1662_s24 = sshll.u32 %s1655_s19, 2  ;;  %v2858_v2 = vmov 0.0   ;;  %s2017_s29 = smov 96  }
   0xd   : > { %p207_p6 = scmp.lt.s32.totalorder %s1662_s24, 7  ;;  %s2018_s30 = smov 32  }
   0xe   : > { %s2019_s5 = smov 64  }
   0xf   : > { %s2929_s24 = smov (!%p207_p6, %s1662_s24), 7 }
  0x10   : > { %s1663_s25 = sshll.u32 %s2929_s24, 3 }
  0x11   : > { %s2064_s28 = scalar_lea.vmem %s2853_s0, %s1663_s25  ;;  %s2838_s12 = scalar_lea.vmem %s2857_s4, %s1663_s25 }
  0x12   : > { %v2067_v0 = vld [vmem:[%s2064_s28] sm:$0xff]  ;;  %v2070_v1 = vld [vmem:[%s2064_s28 + $0x8] sm:$0xff] }
  0x13   : > { %vm401_vm0 = vcmp.ge.f32.partialorder %v2067_v0, 0.6  ;;  %vm402_vm1 = vcmp.ge.f32.partialorder %v2070_v1, 0.6  ;;  %vm405_vm2 = vcmp.lt.f32.partialorder %v2067_v0, 1.0  ;;  %vm406_vm3 = vcmp.lt.f32.partialorder %v2070_v1, 1.0 }
  0x14   : > { %vm409_vm4 = vmand %vm401_vm0, %vm405_vm2  ;;  %vm421_vm5 = vcmp.ge.f32.partialorder %v2067_v0, 1.0  ;;  %vm422_vm6 = vcmp.ge.f32.partialorder %v2070_v1, 1.0  ;;  %vm425_vm7 = vcmp.lt.f32.partialorder %v2067_v0, 1.4  ;;  %vm426_vm8 = vcmp.lt.f32.partialorder %v2070_v1, 1.4 }
  0x15   : > { %vm410_vm9 = vmand %vm402_vm1, %vm406_vm3  ;;  %v2081_v3 = vsel %vm409_vm4, 1.0, %v2858_v2  ;;  %vm441_vm10 = vcmp.ge.f32.partialorder %v2067_v0, 1.4  ;;  %vm442_vm11 = vcmp.ge.f32.partialorder %v2070_v1, 1.4  ;;  %v2086_v4 = vadd.f32 -1.0, %v2067_v0 }
  0x16   : > { %v2089_v5 = vsel %vm410_vm9, 1.0, %v2858_v2  ;;  %vm429_vm12 = vmand %vm421_vm5, %vm425_vm7  ;;  %vm445_vm13 = vcmp.lt.f32.partialorder %v2067_v0, 1.8  ;;  %vm446_vm14 = vcmp.lt.f32.partialorder %v2070_v1, 1.8  ;;  %v1743_v6 = vadd.f32 -1.0, %v2070_v1 }
  0x17   : > { %vm430_vm15 = vmand %vm422_vm6, %vm426_vm8  ;;  %v1698_v7 = vsel %vm429_vm12, 1.0, %v2858_v2  ;;  %vm461_vm0 = vcmp.ge.f32.partialorder %v2067_v0, 1.8  ;;  %vm462_vm1 = vcmp.ge.f32.partialorder %v2070_v1, 1.8  ;;  %v709_v8 = vmul.f32 2.5, %v2086_v4 }
  0x18   : > { %v1699_v9 = vsel %vm430_vm15, 1.0, %v2858_v2  ;;  %vm449_vm2 = vmand %vm441_vm10, %vm445_vm13  ;;  %vm465_vm3 = vcmp.lt.f32.partialorder %v2067_v0, 2.2  ;;  %vm466_vm4 = vcmp.lt.f32.partialorder %v2070_v1, 2.2  ;;  %v710_v10 = vmul.f32 2.5, %v1743_v6 }
  0x19   : > { %vm450_vm5 = vmand %vm442_vm11, %vm446_vm14  ;;  %v1702_v11 = vsel %vm449_vm2, 1.0, %v2858_v2  ;;  %v1738_v12 = vadd.f32 -0.6, %v2067_v0  ;;  %v1739_v13 = vadd.f32 -0.6, %v2070_v1  ;;  %v713_v14 = vmul.f32 %v1698_v7, %v709_v8 }
  0x1a   : > { %v1703_v15 = vsel %vm450_vm5, 1.0, %v2858_v2  ;;  %vm469_vm6 = vmand %vm461_vm0, %vm465_vm3  ;;  %v2108_v16 = vsub.f32 1.4, %v2067_v0  ;;  %v2111_v17 = vsub.f32 1.4, %v2070_v1  ;;  %v714_v18 = vmul.f32 %v1699_v9, %v710_v10 }
  0x1b   : > { %vm470_vm7 = vmand %vm462_vm1, %vm466_vm4  ;;  %v1706_v19 = vsel %vm469_vm6, 1.0, %v2858_v2  ;;  %v681_v20 = vmul.f32 2.5, %v1738_v12  ;;  %v682_v21 = vmul.f32 2.5, %v1739_v13  ;;  %v2117_v22 = vsub.f32 1.8, %v2067_v0 }
  0x1c   : > { %v1707_v23 = vsel %vm470_vm7, 1.0, %v2858_v2  ;;  %v693_v24 = vmul.f32 2.5, %v2108_v16  ;;  %v694_v25 = vmul.f32 2.5, %v2111_v17  ;;  %v2123_v26 = vsub.f32 1.8, %v2070_v1 }
  0x1d   : > { %v685_v27 = vmul.f32 %v2081_v3, %v681_v20  ;;  %v686_v28 = vmul.f32 %v2089_v5, %v682_v21  ;;  %v721_v29 = vmul.f32 2.5, %v2117_v22  ;;  %v1746_v30 = vadd.f32 -1.4, %v2067_v0 }
  0x1e   : > { %v697_v31 = vmul.f32 %v1698_v7, %v693_v24  ;;  %v698_v32 = vmul.f32 %v1699_v9, %v694_v25  ;;  %v722_v33 = vmul.f32 2.5, %v2123_v26  ;;  %v1747_v34 = vadd.f32 -1.4, %v2070_v1 }
  0x1f   : > { %v725_v35 = vmul.f32 %v1702_v11, %v721_v29  ;;  %v737_v36 = vmul.f32 2.5, %v1746_v30  ;;  %v745_v37 = vsub.f32 2.2, %v2067_v0  ;;  %v746_v38 = vsub.f32 2.2, %v2070_v1 }
  0x20   : > { %v2133_v39 = vadd.f32 %v697_v31, %v685_v27  ;;  %v2135_v40 = vadd.f32 %v698_v32, %v686_v28  ;;  %v726_v41 = vmul.f32 %v1703_v15, %v722_v33  ;;  %v738_v42 = vmul.f32 2.5, %v1747_v34 }
  0x21   : > { %v729_v43 = vadd.f32 %v725_v35, %v713_v14  ;;  %v741_v44 = vmul.f32 %v1702_v11, %v737_v36  ;;  %v749_v45 = vmul.f32 2.5, %v745_v37  ;;  %v750_v46 = vmul.f32 2.5, %v746_v38 }
  0x22   : > { %v730_v47 = vadd.f32 %v726_v41, %v714_v18  ;;  %v742_v48 = vmul.f32 %v1703_v15, %v738_v42  ;;  %v901_v49 = vmul.f32 1.25, %v1738_v12  ;;  %v902_v50 = vmul.f32 1.25, %v1739_v13 }
  0x23   : > { %v753_v51 = vmul.f32 %v1706_v19, %v749_v45  ;;  %v754_v52 = vmul.f32 %v1707_v23, %v750_v46  ;;  %v909_v53 = vmul.f32 1.25, %v2117_v22  ;;  %v910_v54 = vmul.f32 1.25, %v2123_v26 }
  0x24   : > { %v905_v55 = vmul.f32 %v901_v49, %v2133_v39  ;;  %v906_v56 = vmul.f32 %v902_v50, %v2135_v40  ;;  %v921_v57 = vmul.f32 1.25, %v2086_v4  ;;  %v922_v58 = vmul.f32 1.25, %v1743_v6 }
  0x25   : > { %v757_v59 = vadd.f32 %v753_v51, %v741_v44  ;;  %v758_v60 = vadd.f32 %v754_v52, %v742_v48  ;;  %v913_v61 = vmul.f32 %v909_v53, %v729_v43  ;;  %v914_v62 = vmul.f32 %v910_v54, %v730_v47 }
  0x26   : > { %v925_v63 = vmul.f32 %v921_v57, %v729_v43  ;;  %v926_v7 = vmul.f32 %v922_v58, %v730_v47  ;;  %v929_v8 = vmul.f32 1.25, %v745_v37  ;;  %v930_v9 = vmul.f32 1.25, %v746_v38 }
  0x27   : > { %v2142_v10 = vadd.f32 %v913_v61, %v905_v55  ;;  %v2144_v11 = vadd.f32 %v914_v62, %v906_v56  ;;  %v1081_v14 = vmul.f32 0.8333333, %v1738_v12  ;;  %v1082_v15 = vmul.f32 0.8333333, %v1739_v13 }
  0x28   : > { %v933_v18 = vmul.f32 %v929_v8, %v757_v59  ;;  %v934_v19 = vmul.f32 %v930_v9, %v758_v60  ;;  %v1089_v20 = vmul.f32 0.8333333, %v745_v37  ;;  %v1090_v21 = vmul.f32 0.8333333, %v746_v38 }
  0x29   : > { %v1085_v4 = vmul.f32 %v1081_v14, %v2142_v10  ;;  %v1086_v6 = vmul.f32 %v1082_v15, %v2144_v11  ;;  %vm361_vm8 = vcmp.ge.f32.partialorder %v2067_v0, -0.2  ;;  %vm362_vm9 = vcmp.ge.f32.partialorder %v2070_v1, -0.2 }
  0x2a   : > { %v937_v23 = vadd.f32 %v933_v18, %v925_v63  ;;  %v938_v24 = vadd.f32 %v934_v19, %v926_v7  ;;  %vm365_vm10 = vcmp.lt.f32.partialorder %v2067_v0, 0.2  ;;  %vm366_vm11 = vcmp.lt.f32.partialorder %v2070_v1, 0.2 }
  0x2b   : > { %vm369_vm12 = vmand %vm361_vm8, %vm365_vm10  ;;  %vm381_vm13 = vcmp.ge.f32.partialorder %v2067_v0, 0.2  ;;  %vm382_vm14 = vcmp.ge.f32.partialorder %v2070_v1, 0.2  ;;  %vm385_vm15 = vcmp.lt.f32.partialorder %v2067_v0, 0.6 }
  0x2c   : > { %v1093_v12 = vmul.f32 %v1089_v20, %v937_v23  ;;  %v1094_v13 = vmul.f32 %v1090_v21, %v938_v24  ;;  %vm370_vm0 = vmand %vm362_vm9, %vm366_vm11  ;;  %v2156_v25 = vsel %vm369_vm12, 1.0, %v2858_v2  ;;  %vm386_vm1 = vcmp.lt.f32.partialorder %v2070_v1, 0.6 }
  0x2d   : > { %v2160_v27 = vsel %vm370_vm0, 1.0, %v2858_v2  ;;  %vm389_vm2 = vmand %vm381_vm13, %vm385_vm15  ;;  %v1730_v28 = vadd.f32 0.2, %v2067_v0  ;;  %v1731_v29 = vadd.f32 0.2, %v2070_v1  ;;  %v661_v30 = vsub.f32 1.0, %v2067_v0 }
  0x2e   : > { %v1097_v31 = vadd.f32 %v1093_v12, %v1085_v4  ;;  %v1098_v32 = vadd.f32 %v1094_v13, %v1086_v6  ;;  %vm390_vm3 = vmand %vm382_vm14, %vm386_vm1  ;;  %v1690_v33 = vsel %vm389_vm2, 1.0, %v2858_v2  ;;  %v2167_v34 = vsub.f32 0.6, %v2067_v0 }
  0x2f   : > { %v1691_v35 = vsel %vm390_vm3, 1.0, %v2858_v2  ;;  %v625_v36 = vmul.f32 2.5, %v1730_v28  ;;  %v626_v37 = vmul.f32 2.5, %v1731_v29  ;;  %v2171_v38 = vsub.f32 0.6, %v2070_v1 }
  0x30   : > { %v1891_v41 = vpack.i.bf16 %v1098_v32, %v1097_v31  ;;  %v637_v42 = vmul.f32 2.5, %v2167_v34  ;;  %v2175_v43 = vadd.f32 -0.2, %v2067_v0  ;;  %v2178_v44 = vadd.f32 -0.2, %v2070_v1  ;;  %v2202_v31 = vld [vmem:[%s2064_s28 + $0x10] sm:$0xff] }
  0x31   : > { %2873 = vst [vmem:[#allocation5_spill] sm:$0xff] %v2171_v38  ;;  %v629_v45 = vmul.f32 %v2156_v25, %v625_v36  ;;  %v630_v46 = vmul.f32 %v2160_v27, %v626_v37  ;;  %v638_v47 = vmul.f32 2.5, %v2171_v38  ;;  %v662_v48 = vsub.f32 1.0, %v2070_v1  ;;  %v2205_v32 = vld [vmem:[%s2064_s28 + $0x18] sm:$0xff] }
  0x32   : > { %1892 = vrot.lane.b32.xlu1 %v1891_v41, %s2017_s29  ;;  %v641_v49 = vmul.f32 %v1690_v33, %v637_v42  ;;  %v653_v50 = vmul.f32 2.5, %v2175_v43  ;;  %v654_v51 = vmul.f32 2.5, %v2178_v44  ;;  %v665_v52 = vmul.f32 2.5, %v661_v30 }
  0x33   : > { %v642_v53 = vmul.f32 %v1691_v35, %v638_v47  ;;  %v666_v54 = vmul.f32 2.5, %v662_v48  ;;  %v861_v55 = vmul.f32 1.25, %v1730_v28  ;;  %v862_v56 = vmul.f32 1.25, %v1731_v29 }
  0x34   : > { %v2187_v57 = vadd.f32 %v641_v49, %v629_v45  ;;  %v657_v58 = vmul.f32 %v1690_v33, %v653_v50  ;;  %v658_v59 = vmul.f32 %v1691_v35, %v654_v51  ;;  %v669_v60 = vmul.f32 %v2081_v3, %v665_v52 }
  0x35   : > { %v2190_v61 = vadd.f32 %v642_v53, %v630_v46  ;;  %v670_v62 = vmul.f32 %v2089_v5, %v666_v54  ;;  %v869_v63 = vmul.f32 1.25, %v661_v30  ;;  %v870_v7 = vmul.f32 1.25, %v662_v48 }
  0x36   : > { %2874 = vst [vmem:[#allocation6_spill] sm:$0xff] %v2187_v57  ;;  %v673_v8 = vadd.f32 %v669_v60, %v657_v58  ;;  %v865_v9 = vmul.f32 %v861_v55, %v2187_v57  ;;  %v881_v14 = vmul.f32 1.25, %v2175_v43  ;;  %v882_v15 = vmul.f32 1.25, %v2178_v44 }
  0x37   : > { %2875 = vst [vmem:[#allocation7_spill] sm:$0xff] %v2190_v61  ;;  %v674_v18 = vadd.f32 %v670_v62, %v658_v59  ;;  %v866_v19 = vmul.f32 %v862_v56, %v2190_v61  ;;  %v889_v3 = vmul.f32 1.25, %v2108_v16  ;;  %v890_v20 = vmul.f32 1.25, %v2111_v17 }
  0x38   : > { %v873_v21 = vmul.f32 %v869_v63, %v673_v8  ;;  %v885_v5 = vmul.f32 %v881_v14, %v673_v8  ;;  %v1029_v4 = vmul.f32 0.8333333, %v661_v30  ;;  %v1030_v6 = vmul.f32 0.8333333, %v662_v48 }
  0x39   : > { %v874_v23 = vmul.f32 %v870_v7, %v674_v18  ;;  %v886_v24 = vmul.f32 %v882_v15, %v674_v18  ;;  %v893_v12 = vmul.f32 %v889_v3, %v2133_v39  ;;  %v894_v13 = vmul.f32 %v890_v20, %v2135_v40 }
  0x3a   : > { %v877_v33 = vadd.f32 %v873_v21, %v865_v9  ;;  %v1041_v35 = vmul.f32 0.8333333, %v1730_v28  ;;  %v1042_v36 = vmul.f32 0.8333333, %v1731_v29  ;;  %v1049_v37 = vmul.f32 0.8333333, %v2108_v16 }
  0x3b   : > { %v878_v41 = vadd.f32 %v874_v23, %v866_v19  ;;  %v2208_v42 = vadd.f32 %v893_v12, %v885_v5  ;;  %v2210_v30 = vadd.f32 %v894_v13, %v886_v24  ;;  %v1050_v45 = vmul.f32 0.8333333, %v2111_v17 }
  0x3c   : > { %v1045_v46 = vmul.f32 %v1041_v35, %v877_v33  ;;  %v2213_v39 = vmul.f32 %v1029_v4, %v877_v33  ;;  %vm283_vm4 = vcmp.ge.f32.partialorder %v2202_v31, -1.8  ;;  %vm284_vm5 = vcmp.ge.f32.partialorder %v2205_v32, -1.8 }
  0x3d   : > { %v2217_v40 = vmul.f32 %v1030_v6, %v878_v41  ;;  %v1046_v28 = vmul.f32 %v1042_v36, %v878_v41  ;;  %v1053_v29 = vmul.f32 %v1049_v37, %v2208_v42  ;;  %v1054_v16 = vmul.f32 %v1050_v45, %v2210_v30 }
  0x3e   : > { %2876 = vst [vmem:[#allocation8_spill] sm:$0xff] %v2213_v39  ;;  %vm287_vm6 = vcmp.lt.f32.partialorder %v2202_v31, -1.4  ;;  %vm288_vm7 = vcmp.lt.f32.partialorder %v2205_v32, -1.4  ;;  %vm307_vm11 = vcmp.lt.f32.partialorder %v2202_v31, -1.0 }
  0x3f   : > { %2877 = vst [vmem:[#allocation9_spill] sm:$0xff] %v2217_v40  ;;  %vm303_vm8 = vcmp.ge.f32.partialorder %v2202_v31, -1.4  ;;  %v1057_v17 = vadd.f32 %v1053_v29, %v1045_v46  ;;  %v1058_v47 = vadd.f32 %v1054_v16, %v1046_v28  ;;  %vm2224_vm9 = vmand %vm283_vm4, %vm287_vm6  ;;  %vm304_vm10 = vcmp.ge.f32.partialorder %v2205_v32, -1.4 }
  0x40   : > { %vm2230_vm12 = vmand %vm284_vm5, %vm288_vm7  ;;  %vm308_vm13 = vcmp.lt.f32.partialorder %v2205_v32, -1.0  ;;  %vm323_vm14 = vcmp.ge.f32.partialorder %v2202_v31, -1.0  ;;  %vm324_vm0 = vcmp.ge.f32.partialorder %v2205_v32, -1.0  ;;  %vm327_vm1 = vcmp.lt.f32.partialorder %v2202_v31, -0.6 }
  0x41   : > { %v1881_v50 = vpack.i.bf16 %v1058_v47, %v1057_v17  ;;  %vm311_vm15 = vmand %vm303_vm8, %vm307_vm11  ;;  %vm328_vm2 = vcmp.lt.f32.partialorder %v2205_v32, -0.6  ;;  %vm343_vm4 = vcmp.ge.f32.partialorder %v2202_v31, -0.6  ;;  %vm344_vm5 = vcmp.ge.f32.partialorder %v2205_v32, -0.6 }
  0x42   : > { %vm312_vm3 = vmand %vm304_vm10, %vm308_vm13  ;;  %v523_v51 = vsub.f32 -1.0, %v2202_v31  ;;  %v1676_v52 = vsel %vm311_vm15, 1.0, %v2858_v2  ;;  %vm347_vm7 = vcmp.lt.f32.partialorder %v2202_v31, -0.2  ;;  %vm348_vm8 = vcmp.lt.f32.partialorder %v2205_v32, -0.2 }
  0x43   : > { %1882 = vrot.lane.b32.xlu0 %v1881_v50, %s2018_s30  ;;  %vm331_vm6 = vmand %vm323_vm14, %vm327_vm1  ;;  %v524_v53 = vsub.f32 -1.0, %v2205_v32  ;;  %v2250_v54 = vsel %vm2224_vm9, 1.0, %v2858_v2  ;;  %v1677_v55 = vsel %vm312_vm3, 1.0, %v2858_v2  ;;  %v2258_v58 = vsel %vm2230_vm12, 1.0, %v2858_v2 }
  0x44   : > { %2882 = vst [vmem:[#allocation10_spill] sm:$0xff] %v2250_v54  ;;  %vm332_vm10 = vmand %vm324_vm0, %vm328_vm2  ;;  %v527_v56 = vmul.f32 2.5, %v523_v51  ;;  %v2263_v59 = vadd.f32 1.8, %v2202_v31  ;;  %v2266_v60 = vadd.f32 1.8, %v2205_v32 }
  0x45   : > { %2883 = vst [vmem:[#allocation11_spill] sm:$0xff] %v2258_v58  ;;  %vm351_vm11 = vmand %vm343_vm4, %vm347_vm7  ;;  %v528_v62 = vmul.f32 2.5, %v524_v53  ;;  %v1680_v63 = vsel %vm331_vm6, 1.0, %v2858_v2  ;;  %v1681_v7 = vsel %vm332_vm10, 1.0, %v2858_v2  ;;  %v2281_v3 = vadd.f32 1.4, %v2202_v31 }
  0x46   : > { %vm352_vm9 = vmand %vm344_vm5, %vm348_vm8  ;;  %v2273_v8 = vsel %vm351_vm11, 1.0, %v2858_v2  ;;  %v531_v9 = vmul.f32 %v1676_v52, %v527_v56  ;;  %v515_v15 = vmul.f32 2.5, %v2263_v59  ;;  %v516_v18 = vmul.f32 2.5, %v2266_v60 }
  0x47   : > { %v2276_v14 = vsel %vm352_vm9, 1.0, %v2858_v2  ;;  %v532_v19 = vmul.f32 %v1677_v55, %v528_v62  ;;  %v2284_v20 = vadd.f32 1.4, %v2205_v32  ;;  %v551_v21 = vsub.f32 -0.6, %v2202_v31 }
  0x48   : > { %v519_v5 = vmul.f32 %v2250_v54, %v515_v15  ;;  %v520_v4 = vmul.f32 %v2258_v58, %v516_v18  ;;  %v552_v6 = vsub.f32 -0.6, %v2205_v32  ;;  %v2291_v23 = vadd.f32 1.0, %v2202_v31 }
  0x49   : > { %v543_v24 = vmul.f32 2.5, %v2281_v3  ;;  %v544_v12 = vmul.f32 2.5, %v2284_v20  ;;  %v555_v13 = vmul.f32 2.5, %v551_v21  ;;  %v2296_v33 = vadd.f32 1.0, %v2205_v32 }
  0x4a   : > { %v535_v35 = vadd.f32 %v531_v9, %v519_v5  ;;  %v536_v36 = vadd.f32 %v532_v19, %v520_v4  ;;  %v556_v37 = vmul.f32 2.5, %v552_v6  ;;  %v571_v41 = vmul.f32 2.5, %v2291_v23 }
  0x4b   : > { %v547_v45 = vmul.f32 %v1676_v52, %v543_v24  ;;  %v548_v46 = vmul.f32 %v1677_v55, %v544_v12  ;;  %v559_v28 = vmul.f32 %v1680_v63, %v555_v13  ;;  %v572_v29 = vmul.f32 2.5, %v2296_v33 }
  0x4c   : > { %v560_v16 = vmul.f32 %v1681_v7, %v556_v37  ;;  %v575_v17 = vmul.f32 %v1680_v63, %v571_v41  ;;  %v579_v47 = vsub.f32 -0.2, %v2202_v31  ;;  %v580_v48 = vsub.f32 -0.2, %v2205_v32 }
  0x4d   : > { %v563_v49 = vadd.f32 %v559_v28, %v547_v45  ;;  %v576_v50 = vmul.f32 %v1681_v7, %v572_v29  ;;  %v771_v56 = vmul.f32 1.25, %v523_v51  ;;  %v772_v62 = vmul.f32 1.25, %v524_v53 }
  0x4e   : > { %v564_v9 = vadd.f32 %v560_v16, %v548_v46  ;;  %v583_v15 = vmul.f32 2.5, %v579_v47  ;;  %v584_v18 = vmul.f32 2.5, %v580_v48  ;;  %v783_v19 = vmul.f32 1.25, %v2263_v59 }
  0x4f   : > { %v2303_v52 = vmul.f32 %v772_v62, %v536_v36  ;;  %v784_v55 = vmul.f32 1.25, %v2266_v60  ;;  %v791_v5 = vmul.f32 1.25, %v551_v21  ;;  %v792_v4 = vmul.f32 1.25, %v552_v6 }
  0x50   : > { %v587_v63 = vmul.f32 %v2273_v8, %v583_v15  ;;  %v588_v24 = vmul.f32 %v2276_v14, %v584_v18  ;;  %v787_v12 = vmul.f32 %v783_v19, %v535_v35  ;;  %v803_v7 = vmul.f32 1.25, %v2281_v3 }
  0x51   : > { %2884 = vst [vmem:[#allocation12_spill] sm:$0xff] %v2303_v52  ;;  %v788_v51 = vmul.f32 %v784_v55, %v536_v36  ;;  %v795_v53 = vmul.f32 %v791_v5, %v563_v49  ;;  %v796_v13 = vmul.f32 %v792_v4, %v564_v9  ;;  %v804_v37 = vmul.f32 1.25, %v2284_v20 }
  0x52   : > { %v2310_v41 = vadd.f32 %v587_v63, %v575_v17  ;;  %v2312_v45 = vadd.f32 %v588_v24, %v576_v50  ;;  %v807_v46 = vmul.f32 %v803_v7, %v563_v49  ;;  %v811_v28 = vmul.f32 1.25, %v579_v47 }
  0x53   : > { %v799_v29 = vadd.f32 %v795_v53, %v787_v12  ;;  %v800_v16 = vadd.f32 %v796_v13, %v788_v51  ;;  %v808_v62 = vmul.f32 %v804_v37, %v564_v9  ;;  %v812_v15 = vmul.f32 1.25, %v580_v48 }
  0x54   : > { %v815_v18 = vmul.f32 %v811_v28, %v2310_v41  ;;  %v951_v19 = vmul.f32 0.8333333, %v551_v21  ;;  %v952_v2 = vmul.f32 0.8333333, %v552_v6  ;;  %v963_v36 = vmul.f32 0.8333333, %v2263_v59 }
  0x55   : > { %v816_v55 = vmul.f32 %v812_v15, %v2312_v45  ;;  %v964_v5 = vmul.f32 0.8333333, %v2266_v60  ;;  %v971_v17 = vmul.f32 0.8333333, %v579_v47  ;;  %v972_v4 = vmul.f32 0.8333333, %v580_v48 }
  0x56   : > { %v2318_v50 = vadd.f32 %v815_v18, %v807_v46  ;;  %v2320_v49 = vmul.f32 %v952_v2, %v800_v16  ;;  %v967_v63 = vmul.f32 %v963_v36, %v799_v29  ;;  %v2324_v12 = vmul.f32 %v771_v56, %v535_v35 }
  0x57   : > { %v2322_v24 = vadd.f32 %v816_v55, %v808_v62  ;;  %v968_v9 = vmul.f32 %v964_v5, %v800_v16  ;;  %v2326_v21 = vmul.f32 %v951_v19, %v799_v29  ;;  %v1061_v6 = vmul.f32 0.8333333, %v2175_v43 }
  0x58   : > { %2885 = vst [vmem:[#allocation13_spill] sm:$0xff] %v2320_v49  ;;  %v975_v59 = vmul.f32 %v971_v17, %v2318_v50  ;;  %v1062_v60 = vmul.f32 0.8333333, %v2178_v44  ;;  %v1069_v47 = vmul.f32 0.8333333, %v2117_v22  ;;  %vm305_vm3 = vcmp.lt.f32.partialorder %v2067_v0, -1.0 }
  0x59   : > { %2886 = vst [vmem:[#allocation14_spill] sm:$0xff] %v2324_v12  ;;  %v976_v48 = vmul.f32 %v972_v4, %v2322_v24  ;;  %v1070_v2 = vmul.f32 0.8333333, %v2123_v26  ;;  %vm281_vm12 = vcmp.ge.f32.partialorder %v2067_v0, -1.8  ;;  %v1065_v56 = vmul.f32 %v1061_v6, %v2208_v42 }
  0x5a   : > { %2887 = vst [vmem:[#allocation15_spill] sm:$0xff] %v2326_v21  ;;  %vm282_vm13 = vcmp.ge.f32.partialorder %v2070_v1, -1.8  ;;  %v979_v35 = vadd.f32 %v975_v59, %v967_v63  ;;  %v1066_v7 = vmul.f32 %v1062_v60, %v2210_v30  ;;  %v1073_v51 = vmul.f32 %v1069_v47, %v2142_v10 }
  0x5b   : > { %v980_v43 = vadd.f32 %v976_v48, %v968_v9  ;;  %v1074_v44 = vmul.f32 %v1070_v2, %v2144_v11  ;;  %vm285_vm14 = vcmp.lt.f32.partialorder %v2067_v0, -1.4  ;;  %vm286_vm15 = vcmp.lt.f32.partialorder %v2070_v1, -1.4 }
  0x5c   : > { %v1077_v22 = vadd.f32 %v1073_v51, %v1065_v56  ;;  %vm2342_vm0 = vmand %vm281_vm12, %vm285_vm14  ;;  %vm301_vm1 = vcmp.ge.f32.partialorder %v2067_v0, -1.4  ;;  %vm302_vm2 = vcmp.ge.f32.partialorder %v2070_v1, -1.4  ;;  %vm306_vm5 = vcmp.lt.f32.partialorder %v2070_v1, -1.0 }
  0x5d   : > { %v1896_v42 = vpack.i.bf16 %v980_v43, %v979_v35  ;;  %v1078_v10 = vadd.f32 %v1074_v44, %v1066_v7  ;;  %vm2351_vm4 = vmand %vm282_vm13, %vm286_vm15  ;;  %vm321_vm7 = vcmp.ge.f32.partialorder %v2067_v0, -1.0  ;;  %vm322_vm8 = vcmp.ge.f32.partialorder %v2070_v1, -1.0 }
  0x5e   : > { %vm309_vm6 = vmand %vm301_vm1, %vm305_vm3  ;;  %vm325_vm10 = vcmp.lt.f32.partialorder %v2067_v0, -0.6  ;;  %vm326_vm9 = vcmp.lt.f32.partialorder %v2070_v1, -0.6  ;;  %vm341_vm12 = vcmp.ge.f32.partialorder %v2067_v0, -0.6 }
  0x5f   : > { %1897 = vrot.lane.b32.xlu1 %v1896_v42, %s2018_s30  ;;  %v1886_v30 = vpack.i.bf16 %v1078_v10, %v1077_v22  ;;  %vm310_vm11 = vmand %vm302_vm2, %vm306_vm5  ;;  %vm342_vm14 = vcmp.ge.f32.partialorder %v2070_v1, -0.6  ;;  %vm345_vm15 = vcmp.lt.f32.partialorder %v2067_v0, -0.2  ;;  %v521_v13 = vsub.f32 -1.0, %v2067_v0 }
  0x60   : > { %vm2362_vm13 = vmand %vm321_vm7, %vm325_vm10  ;;  %v2894_v37 = vmov 0.0   ;;  %vm346_vm2 = vcmp.lt.f32.partialorder %v2070_v1, -0.2  ;;  %v522_v28 = vsub.f32 -1.0, %v2070_v1  ;;  %v2380_v62 = vadd.f32 1.8, %v2067_v0 }
  0x61   : > { %1887 = vrot.lane.b32.xlu0 %v1886_v30, %s2019_s5  ;;  %v1674_v46 = vsel %vm309_vm6, 1.0, %v2894_v37  ;;  %vm330_vm1 = vmand %vm322_vm8, %vm326_vm9  ;;  %v2376_v29 = vsel %vm2342_vm0, 1.0, %v2894_v37  ;;  %v1675_v16 = vsel %vm310_vm11, 1.0, %v2894_v37  ;;  %v525_v15 = vmul.f32 2.5, %v521_v13 }
  0x62   : > { %2895 = vst [vmem:[#allocation16_spill] sm:$0xff] %v2376_v29  ;;  %vm349_vm3 = vmand %vm341_vm12, %vm345_vm15  ;;  %v2385_v18 = vsel %vm2351_vm4, 1.0, %v2894_v37  ;;  %v1678_v19 = vsel %vm2362_vm13, 1.0, %v2894_v37  ;;  %v2393_v36 = vadd.f32 1.8, %v2070_v1  ;;  %v526_v55 = vmul.f32 2.5, %v522_v28 }
  0x63   : > { %2896 = vst [vmem:[#allocation17_spill] sm:$0xff] %v2385_v18  ;;  %vm350_vm0 = vmand %vm342_vm14, %vm346_vm2  ;;  %v1679_v5 = vsel %vm330_vm1, 1.0, %v2894_v37  ;;  %v2397_v17 = vsel %vm349_vm3, 1.0, %v2894_v37  ;;  %v513_v4 = vmul.f32 2.5, %v2380_v62  ;;  %v529_v63 = vmul.f32 %v1674_v46, %v525_v15 }
  0x64   : > { %v514_v9 = vmul.f32 2.5, %v2393_v36  ;;  %v530_v59 = vmul.f32 %v1675_v16, %v526_v55  ;;  %v2402_v6 = vadd.f32 1.4, %v2067_v0  ;;  %v2405_v60 = vadd.f32 1.4, %v2070_v1 }
  0x65   : > { %v2408_v47 = vsel %vm350_vm0, 1.0, %v2894_v37  ;;  %v517_v48 = vmul.f32 %v2376_v29, %v513_v4  ;;  %v549_v2 = vsub.f32 -0.6, %v2067_v0  ;;  %v550_v35 = vsub.f32 -0.6, %v2070_v1 }
  0x66   : > { %v518_v56 = vmul.f32 %v2385_v18, %v514_v9  ;;  %v541_v7 = vmul.f32 2.5, %v2402_v6  ;;  %v542_v51 = vmul.f32 2.5, %v2405_v60  ;;  %v2417_v43 = vadd.f32 1.0, %v2067_v0 }
  0x67   : > { %v533_v44 = vadd.f32 %v529_v63, %v517_v48  ;;  %v553_v22 = vmul.f32 2.5, %v549_v2  ;;  %v554_v26 = vmul.f32 2.5, %v550_v35  ;;  %v2420_v42 = vadd.f32 1.0, %v2070_v1 }
  0x68   : > { %2897 = vst [vmem:[#allocation18_spill] sm:$0xff] %v2417_v43  ;;  %v534_v10 = vadd.f32 %v530_v59, %v518_v56  ;;  %v545_v11 = vmul.f32 %v1674_v46, %v541_v7  ;;  %v546_v30 = vmul.f32 %v1675_v16, %v542_v51  ;;  %v569_v53 = vmul.f32 2.5, %v2417_v43 }
  0x69   : > { %2898 = vst [vmem:[#allocation19_spill] sm:$0xff] %v2420_v42  ;;  %v557_v15 = vmul.f32 %v1678_v19, %v553_v22  ;;  %v558_v55 = vmul.f32 %v1679_v5, %v554_v26  ;;  %v570_v4 = vmul.f32 2.5, %v2420_v42  ;;  %v577_v9 = vsub.f32 -0.2, %v2067_v0 }
  0x6a   : > { %v573_v49 = vmul.f32 %v1678_v19, %v569_v53  ;;  %v578_v21 = vsub.f32 -0.2, %v2070_v1  ;;  %v769_v63 = vmul.f32 1.25, %v521_v13  ;;  %v770_v48 = vmul.f32 1.25, %v522_v28 }
  0x6b   : > { %v561_v52 = vadd.f32 %v557_v15, %v545_v11  ;;  %v562_v12 = vadd.f32 %v558_v55, %v546_v30  ;;  %v574_v29 = vmul.f32 %v1679_v5, %v570_v4  ;;  %v581_v18 = vmul.f32 2.5, %v577_v9 }
  0x6c   : > { %v582_v59 = vmul.f32 2.5, %v578_v21  ;;  %v2426_v46 = vmul.f32 %v770_v48, %v534_v10  ;;  %v781_v16 = vmul.f32 1.25, %v2380_v62  ;;  %v782_v56 = vmul.f32 1.25, %v2393_v36 }
  0x6d   : > { %v585_v7 = vmul.f32 %v2397_v17, %v581_v18  ;;  %v789_v51 = vmul.f32 1.25, %v549_v2  ;;  %v790_v22 = vmul.f32 1.25, %v550_v35  ;;  %v801_v19 = vmul.f32 1.25, %v2402_v6 }
  0x6e   : > { %2899 = vst [vmem:[#allocation20_spill] sm:$0xff] %v2426_v46  ;;  %v586_v13 = vmul.f32 %v2408_v47, %v582_v59  ;;  %v785_v28 = vmul.f32 %v781_v16, %v533_v44  ;;  %v786_v26 = vmul.f32 %v782_v56, %v534_v10  ;;  %v802_v5 = vmul.f32 1.25, %v2405_v60 }
  0x6f   : > { %v589_v11 = vadd.f32 %v585_v7, %v573_v49  ;;  %v793_v30 = vmul.f32 %v789_v51, %v561_v52  ;;  %v794_v53 = vmul.f32 %v790_v22, %v562_v12  ;;  %v805_v15 = vmul.f32 %v801_v19, %v561_v52 }
  0x70   : > { %v590_v55 = vadd.f32 %v586_v13, %v574_v29  ;;  %v806_v4 = vmul.f32 %v802_v5, %v562_v12  ;;  %v809_v48 = vmul.f32 1.25, %v577_v9  ;;  %v810_v46 = vmul.f32 1.25, %v578_v21 }
  0x71   : > { %v797_v54 = vadd.f32 %v793_v30, %v785_v28  ;;  %v798_v18 = vadd.f32 %v794_v53, %v786_v26  ;;  %v949_v58 = vmul.f32 0.8333333, %v549_v2  ;;  %v950_v39 = vmul.f32 0.8333333, %v550_v35 }
  0x72   : > { %v813_v40 = vmul.f32 %v809_v48, %v589_v11  ;;  %v814_v61 = vmul.f32 %v810_v46, %v590_v55  ;;  %v961_v59 = vmul.f32 0.8333333, %v2380_v62  ;;  %v962_v10 = vmul.f32 0.8333333, %v2393_v36 }
  0x73   : > { %v2436_v16 = vmul.f32 %v950_v39, %v798_v18  ;;  %v969_v49 = vmul.f32 0.8333333, %v577_v9  ;;  %v970_v56 = vmul.f32 0.8333333, %v578_v21  ;;  %v2438_v51 = vmul.f32 %v769_v63, %v533_v44 }
  0x74   : > { %v817_v7 = vadd.f32 %v813_v40, %v805_v15  ;;  %v818_v52 = vadd.f32 %v814_v61, %v806_v4  ;;  %v965_v29 = vmul.f32 %v961_v59, %v797_v54  ;;  %v966_v12 = vmul.f32 %v962_v10, %v798_v18 }
  0x75   : > { %2900 = vst [vmem:[#allocation21_spill] sm:$0xff] %v2436_v16  ;;  %v2440_v22 = vmul.f32 %v949_v58, %v797_v54  ;;  %v2443_v2 = vadd.f32 0.6, %v2067_v0  ;;  %v2446_v35 = vadd.f32 0.6, %v2070_v1  ;;  %v821_v44 = vmul.f32 1.25, %v2417_v43 }
  0x76   : > { %2901 = vst [vmem:[#allocation22_spill] sm:$0xff] %v2438_v51  ;;  %v973_v62 = vmul.f32 %v969_v49, %v817_v7  ;;  %v974_v36 = vmul.f32 %v970_v56, %v818_v52  ;;  %v605_v39 = vsub.f32 0.2, %v2067_v0  ;;  %v606_v21 = vsub.f32 0.2, %v2070_v1 }
  0x77   : > { %2902 = vst [vmem:[#allocation23_spill] sm:$0xff] %v2440_v22  ;;  %v597_v61 = vmul.f32 2.5, %v2443_v2  ;;  %v598_v40 = vmul.f32 2.5, %v2446_v35  ;;  %v822_v54 = vmul.f32 1.25, %v2420_v42  ;;  %v825_v28 = vmul.f32 %v821_v44, %v589_v11 }
  0x78   : > { %v977_v58 = vadd.f32 %v973_v62, %v965_v29  ;;  %v978_v9 = vadd.f32 %v974_v36, %v966_v12  ;;  %v609_v63 = vmul.f32 2.5, %v605_v39  ;;  %v610_v46 = vmul.f32 2.5, %v606_v21 }
  0x79   : > { %v601_v19 = vmul.f32 %v2397_v17, %v597_v61  ;;  %v602_v13 = vmul.f32 %v2408_v47, %v598_v40  ;;  %v829_v5 = vmul.f32 1.25, %v605_v39  ;;  %v826_v30 = vmul.f32 %v822_v54, %v590_v55 }
  0x7a   : > { %v1911_v0 = vpack.i.bf16 %v978_v9, %v977_v58  ;;  %v613_v1 = vmul.f32 %v2156_v25, %v609_v63  ;;  %v614_v26 = vmul.f32 %v2160_v27, %v610_v46  ;;  %v830_v53 = vmul.f32 1.25, %v606_v21 }
  0x7b   : > { %v981_v15 = vmul.f32 0.8333333, %v2402_v6  ;;  %v982_v4 = vmul.f32 0.8333333, %v2405_v60  ;;  %v989_v47 = vmul.f32 0.8333333, %v605_v39 }
  0x7c   : > { %1912 = vrot.lane.b32.xlu0 %v1911_v0, %s2018_s30  ;;  %v2461_v48 = vadd.f32 %v613_v1, %v601_v19  ;;  %v2463_v17 = vadd.f32 %v614_v26, %v602_v13  ;;  %vm407_vm4 = vcmp.lt.f32.partialorder %v2202_v31, 1.0  ;;  %v990_v25 = vmul.f32 0.8333333, %v606_v21 }
  0x7d   : > { %v985_v11 = vmul.f32 %v981_v15, %v817_v7  ;;  %vm363_vm5 = vcmp.ge.f32.partialorder %v2202_v31, -0.2  ;;  %vm364_vm6 = vcmp.ge.f32.partialorder %v2205_v32, -0.2  ;;  %vm367_vm7 = vcmp.lt.f32.partialorder %v2202_v31, 0.2 }
  0x7e   : > { %2903 = vst [vmem:[#allocation24_spill] sm:$0xff] %v2463_v17  ;;  %v833_v27 = vmul.f32 %v829_v5, %v2461_v48  ;;  %v834_v6 = vmul.f32 %v830_v53, %v2463_v17  ;;  %vm368_vm8 = vcmp.lt.f32.partialorder %v2205_v32, 0.2  ;;  %v986_v60 = vmul.f32 %v982_v4, %v818_v52  ;;  %vm371_vm10 = vmand %vm363_vm5, %vm367_vm7 }
  0x7f   : > { %vm383_vm11 = vcmp.ge.f32.partialorder %v2202_v31, 0.2  ;;  %vm384_vm9 = vcmp.ge.f32.partialorder %v2205_v32, 0.2  ;;  %vm387_vm12 = vcmp.lt.f32.partialorder %v2202_v31, 0.6  ;;  %vm372_vm13 = vmand %vm364_vm6, %vm368_vm8 }
  0x80   : > { %v2475_v55 = vadd.f32 %v833_v27, %v825_v28  ;;  %v2477_v18 = vadd.f32 %v834_v6, %v826_v30  ;;  %v2480_v59 = vsel %vm371_vm10, 1.0, %v2894_v37  ;;  %vm388_vm14 = vcmp.lt.f32.partialorder %v2205_v32, 0.6  ;;  %vm391_vm15 = vmand %vm383_vm11, %vm387_vm12 }
  0x81   : > { %v2484_v10 = vsel %vm372_vm13, 1.0, %v2894_v37  ;;  %vm403_vm1 = vcmp.ge.f32.partialorder %v2202_v31, 0.6  ;;  %vm404_vm2 = vcmp.ge.f32.partialorder %v2205_v32, 0.6  ;;  %vm408_vm3 = vcmp.lt.f32.partialorder %v2205_v32, 1.0  ;;  %vm392_vm0 = vmand %vm384_vm9, %vm388_vm14 }
  0x82   : > { %2904 = vst [vmem:[#allocation25_spill] sm:$0xff] %v2475_v55  ;;  %v993_v49 = vmul.f32 %v989_v47, %v2475_v55  ;;  %v994_v56 = vmul.f32 %v990_v25, %v2477_v18  ;;  %v1692_v7 = vsel %vm391_vm15, 1.0, %v2894_v37  ;;  %vm423_vm5 = vcmp.ge.f32.partialorder %v2202_v31, 1.0  ;;  %vm411_vm6 = vmand %vm403_vm1, %vm407_vm4 }
  0x83   : > { %2905 = vst [vmem:[#allocation26_spill] sm:$0xff] %v2477_v18  ;;  %v1693_v52 = vsel %vm392_vm0, 1.0, %v2894_v37  ;;  %vm424_vm7 = vcmp.ge.f32.partialorder %v2205_v32, 1.0  ;;  %vm427_vm8 = vcmp.lt.f32.partialorder %v2202_v31, 1.4  ;;  %vm412_vm11 = vmand %vm404_vm2, %vm408_vm3  ;;  %v1696_v62 = vsel %vm411_vm6, 1.0, %v2894_v37 }
  0x84   : > { %vm428_vm10 = vcmp.lt.f32.partialorder %v2205_v32, 1.4  ;;  %v997_v29 = vadd.f32 %v993_v49, %v985_v11  ;;  %v998_v12 = vadd.f32 %v994_v56, %v986_v60  ;;  %v2501_v36 = vadd.f32 0.2, %v2202_v31  ;;  %vm431_vm9 = vmand %vm423_vm5, %vm427_vm8 }
  0x85   : > { %v1697_v39 = vsel %vm412_vm11, 1.0, %v2894_v37  ;;  %v2505_v21 = vadd.f32 0.2, %v2205_v32  ;;  %v2508_v61 = vsub.f32 0.6, %v2202_v31  ;;  %v663_v40 = vsub.f32 1.0, %v2202_v31  ;;  %vm432_vm4 = vmand %vm424_vm7, %vm428_vm10 }
  0x86   : > { %v1916_v44 = vpack.i.bf16 %v998_v12, %v997_v29  ;;  %v2512_v54 = vsel %vm431_vm9, 1.0, %v2894_v37  ;;  %v627_v58 = vmul.f32 2.5, %v2501_v36  ;;  %v2516_v9 = vsub.f32 0.6, %v2205_v32 }
  0x87   : > { %v2519_v63 = vsel %vm432_vm4, 1.0, %v2894_v37  ;;  %v628_v46 = vmul.f32 2.5, %v2505_v21  ;;  %v639_v19 = vmul.f32 2.5, %v2508_v61  ;;  %v2524_v13 = vadd.f32 -0.2, %v2202_v31 }
  0x88   : > { %1917 = vrot.lane.b32.xlu1 %v1916_v44, %s2019_s5  ;;  %v631_v28 = vmul.f32 %v2480_v59, %v627_v58  ;;  %v640_v0 = vmul.f32 2.5, %v2516_v9  ;;  %v2530_v1 = vadd.f32 -0.2, %v2205_v32  ;;  %v664_v26 = vsub.f32 1.0, %v2205_v32 }
  0x89   : > { %v632_v5 = vmul.f32 %v2484_v10, %v628_v46  ;;  %v643_v30 = vmul.f32 %v1692_v7, %v639_v19  ;;  %v655_v53 = vmul.f32 2.5, %v2524_v13  ;;  %v667_v15 = vmul.f32 2.5, %v663_v40 }
  0x8a   : > { %v644_v4 = vmul.f32 %v1693_v52, %v640_v0  ;;  %v656_v47 = vmul.f32 2.5, %v2530_v1  ;;  %v668_v11 = vmul.f32 2.5, %v664_v26  ;;  %v2537_v25 = vadd.f32 -0.6, %v2202_v31 }
  0x8b   : > { %v2539_v27 = vadd.f32 %v643_v30, %v631_v28  ;;  %v659_v6 = vmul.f32 %v1692_v7, %v655_v53  ;;  %v671_v60 = vmul.f32 %v1696_v62, %v667_v15  ;;  %v2542_v49 = vadd.f32 -0.6, %v2205_v32 }
  0x8c   : > { %v2544_v56 = vadd.f32 %v644_v4, %v632_v5  ;;  %v660_v29 = vmul.f32 %v1693_v52, %v656_v47  ;;  %v672_v12 = vmul.f32 %v1697_v39, %v668_v11  ;;  %v683_v44 = vmul.f32 2.5, %v2537_v25 }
  0x8d   : > { %v675_v58 = vadd.f32 %v671_v60, %v659_v6  ;;  %v684_v46 = vmul.f32 2.5, %v2542_v49  ;;  %v691_v19 = vsub.f32 1.4, %v2202_v31  ;;  %v692_v0 = vsub.f32 1.4, %v2205_v32 }
  0x8e   : > { %v676_v28 = vadd.f32 %v672_v12, %v660_v29  ;;  %v687_v30 = vmul.f32 %v1696_v62, %v683_v44  ;;  %v863_v7 = vmul.f32 1.25, %v2501_v36  ;;  %v864_v53 = vmul.f32 1.25, %v2505_v21 }
  0x8f   : > { %v688_v15 = vmul.f32 %v1697_v39, %v684_v46  ;;  %v695_v5 = vmul.f32 2.5, %v691_v19  ;;  %v696_v4 = vmul.f32 2.5, %v692_v0  ;;  %v871_v52 = vmul.f32 1.25, %v663_v40 }
  0x90   : > { %v867_v47 = vmul.f32 %v863_v7, %v2539_v27  ;;  %v868_v11 = vmul.f32 %v864_v53, %v2544_v56  ;;  %v872_v6 = vmul.f32 1.25, %v664_v26  ;;  %v883_v60 = vmul.f32 1.25, %v2524_v13 }
  0x91   : > { %v699_v22 = vmul.f32 %v2512_v54, %v695_v5  ;;  %v700_v29 = vmul.f32 %v2519_v63, %v696_v4  ;;  %v875_v62 = vmul.f32 %v871_v52, %v675_v58  ;;  %v884_v12 = vmul.f32 1.25, %v2530_v1 }
  0x92   : > { %v876_v44 = vmul.f32 %v872_v6, %v676_v28  ;;  %v887_v16 = vmul.f32 %v883_v60, %v675_v58  ;;  %v891_v39 = vmul.f32 1.25, %v691_v19  ;;  %v892_v46 = vmul.f32 1.25, %v692_v0 }
  0x93   : > { %v703_v51 = vadd.f32 %v699_v22, %v687_v30  ;;  %v704_v18 = vadd.f32 %v700_v29, %v688_v15  ;;  %v879_v55 = vadd.f32 %v875_v62, %v867_v47  ;;  %v888_v7 = vmul.f32 %v884_v12, %v676_v28 }
  0x94   : > { %v880_v42 = vadd.f32 %v876_v44, %v868_v11  ;;  %v1031_v53 = vmul.f32 0.8333333, %v663_v40  ;;  %v1032_v57 = vmul.f32 0.8333333, %v664_v26  ;;  %v1043_v43 = vmul.f32 0.8333333, %v2501_v36 }
  0x95   : > { %v895_v38 = vmul.f32 %v891_v39, %v703_v51  ;;  %v896_v5 = vmul.f32 %v892_v46, %v704_v18  ;;  %v1044_v4 = vmul.f32 0.8333333, %v2505_v21  ;;  %v1051_v52 = vmul.f32 0.8333333, %v691_v19 }
  0x96   : > { %v2560_v17 = vmul.f32 %v1032_v57, %v880_v42  ;;  %v1047_v6 = vmul.f32 %v1043_v43, %v879_v55  ;;  %v1052_v58 = vmul.f32 0.8333333, %v692_v0  ;;  %v2562_v60 = vmul.f32 %v1031_v53, %v879_v55 }
  0x97   : > { %v899_v22 = vadd.f32 %v895_v38, %v887_v16  ;;  %v900_v30 = vadd.f32 %v896_v5, %v888_v7  ;;  %v1048_v15 = vmul.f32 %v1044_v4, %v880_v42  ;;  %vm443_vm12 = vcmp.ge.f32.partialorder %v2202_v31, 1.4 }
  0x98   : > { %vm444_vm13 = vcmp.ge.f32.partialorder %v2205_v32, 1.4  ;;  %vm447_vm14 = vcmp.lt.f32.partialorder %v2202_v31, 1.8  ;;  %vm448_vm15 = vcmp.lt.f32.partialorder %v2205_v32, 1.8 }
  0x99   : > { %v1055_v36 = vmul.f32 %v1051_v52, %v899_v22  ;;  %v1056_v21 = vmul.f32 %v1052_v58, %v900_v30  ;;  %vm451_vm1 = vmand %vm443_vm12, %vm447_vm14  ;;  %v2569_v57 = vadd.f32 -1.0, %v2202_v31  ;;  %v2572_v43 = vadd.f32 -1.0, %v2205_v32 }
  0x9a   : > { %vm452_vm2 = vmand %vm444_vm13, %vm448_vm15  ;;  %v2575_v38 = vsel %vm451_vm1, 1.0, %v2894_v37  ;;  %v719_v42 = vsub.f32 1.8, %v2202_v31  ;;  %v720_v16 = vsub.f32 1.8, %v2205_v32  ;;  %v903_v55 = vmul.f32 1.25, %v2537_v25 }
  0x9b   : > { %v1059_v40 = vadd.f32 %v1055_v36, %v1047_v6  ;;  %v1060_v26 = vadd.f32 %v1056_v21, %v1048_v15  ;;  %v2581_v19 = vsel %vm452_vm2, 1.0, %v2894_v37  ;;  %v711_v0 = vmul.f32 2.5, %v2569_v57 }
  0x9c   : > { %v712_v28 = vmul.f32 2.5, %v2572_v43  ;;  %v723_v47 = vmul.f32 2.5, %v719_v42  ;;  %v724_v11 = vmul.f32 2.5, %v720_v16  ;;  %v904_v29 = vmul.f32 1.25, %v2542_v49 }
  0x9d   : > { %v1926_v62 = vpack.i.bf16 %v1060_v26, %v1059_v40  ;;  %v715_v12 = vmul.f32 %v2512_v54, %v711_v0  ;;  %v907_v44 = vmul.f32 %v903_v55, %v703_v51  ;;  %v911_v39 = vmul.f32 1.25, %v719_v42 }
  0x9e   : > { %v716_v46 = vmul.f32 %v2519_v63, %v712_v28  ;;  %v727_v7 = vmul.f32 %v2575_v38, %v723_v47  ;;  %v728_v53 = vmul.f32 %v2581_v19, %v724_v11  ;;  %v908_v5 = vmul.f32 %v904_v29, %v704_v18 }
  0x9f   : > { %1927 = vrot.lane.b32.xlu0 %v1926_v62, %s2018_s30  ;;  %v912_v4 = vmul.f32 1.25, %v720_v16  ;;  %v1063_v52 = vmul.f32 0.8333333, %v2524_v13  ;;  %v1064_v6 = vmul.f32 0.8333333, %v2530_v1  ;;  %v823_v58 = vmul.f32 1.25, %v2291_v23 }
  0xa0   : > { %v2594_v15 = vadd.f32 %v727_v7, %v715_v12  ;;  %v2596_v51 = vadd.f32 %v728_v53, %v716_v46  ;;  %v1071_v54 = vmul.f32 0.8333333, %v719_v42  ;;  %v1072_v63 = vmul.f32 0.8333333, %v720_v16 }
  0xa1   : > { %v1067_v36 = vmul.f32 %v1063_v52, %v899_v22  ;;  %v1068_v21 = vmul.f32 %v1064_v6, %v900_v30  ;;  %v1728_v55 = vadd.f32 0.6, %v2202_v31  ;;  %v1729_v18 = vadd.f32 0.6, %v2205_v32 }
  0xa2   : > { %v915_v40 = vmul.f32 %v911_v39, %v2594_v15  ;;  %v916_v13 = vmul.f32 %v912_v4, %v2596_v51  ;;  %v607_v1 = vsub.f32 0.2, %v2202_v31  ;;  %v608_v26 = vsub.f32 0.2, %v2205_v32 }
  0xa3   : > { %v599_v0 = vmul.f32 2.5, %v1728_v55  ;;  %v600_v28 = vmul.f32 2.5, %v1729_v18  ;;  %v824_v47 = vmul.f32 1.25, %v2296_v33  ;;  %v827_v42 = vmul.f32 %v823_v58, %v2310_v41 }
  0xa4   : > { %v2606_v22 = vadd.f32 %v915_v40, %v907_v44  ;;  %v2608_v30 = vadd.f32 %v916_v13, %v908_v5  ;;  %v611_v16 = vmul.f32 2.5, %v607_v1  ;;  %v612_v11 = vmul.f32 2.5, %v608_v26 }
  0xa5   : > { %v603_v29 = vmul.f32 %v2273_v8, %v599_v0  ;;  %v604_v62 = vmul.f32 %v2276_v14, %v600_v28  ;;  %v828_v31 = vmul.f32 %v824_v47, %v2312_v45  ;;  %v831_v12 = vmul.f32 1.25, %v607_v1 }
  0xa6   : > { %v1075_v32 = vmul.f32 %v1071_v54, %v2606_v22  ;;  %v1076_v39 = vmul.f32 %v1072_v63, %v2608_v30  ;;  %v615_v46 = vmul.f32 %v2480_v59, %v611_v16  ;;  %v616_v41 = vmul.f32 %v2484_v10, %v612_v11  ;;  %v1845_v16 = vld [vmem:[#allocation2 + $0x78] sm:$0xff] }
  0xa7   : > { %v832_v44 = vmul.f32 1.25, %v608_v26  ;;  %v983_v7 = vmul.f32 0.8333333, %v2281_v3  ;;  %v984_v53 = vmul.f32 0.8333333, %v2284_v20  ;;  %v843_v5 = vmul.f32 1.25, %v1728_v55  ;;  %1443 = vmatpush.bf16.msra.mxu1 %v1845_v16 }
  0xa8   : > { %v1079_v8 = vadd.f32 %v1075_v32, %v1067_v36  ;;  %v1080_v4 = vadd.f32 %v1076_v39, %v1068_v21  ;;  %v619_v14 = vadd.f32 %v615_v46, %v603_v29  ;;  %v620_v52 = vadd.f32 %v616_v41, %v604_v62  ;;  %v1837_v11 = vld [vmem:[#allocation2 + $0x38] sm:$0xff]  ;;  %v1847_v41 = vld [vmem:[#allocation2 + $0x88] sm:$0xff] }
  0xa9   : > { %v987_v45 = vmul.f32 %v983_v7, %v2318_v50  ;;  %v988_v6 = vmul.f32 %v984_v53, %v2322_v24  ;;  %v991_v58 = vmul.f32 0.8333333, %v607_v1  ;;  %v992_v54 = vmul.f32 0.8333333, %v608_v26  ;;  %1848 = vmatpush.bf16.msra.mxu3 %v1837_v11  ;;  %1424 = vmatpush.bf16.msra.mxu0 %v1837_v11  ;;  %v2651_v11 = vld [vmem:[%s2064_s28 + $0x10] sm:$0xff] }
  0xaa   : > { %v1931_v63 = vpack.i.bf16 %v1080_v4, %v1079_v8  ;;  %v835_v59 = vmul.f32 %v831_v12, %v619_v14  ;;  %v836_v40 = vmul.f32 %v832_v44, %v620_v52  ;;  %v844_v10 = vmul.f32 1.25, %v1729_v18  ;;  %1468 = vmatpush.bf16.msra.mxu2 %v1847_v41  ;;  %v1846_v4 = vld [vmem:[#allocation2 + $0x80] sm:$0xff] }
  0xab   : > { %v847_v13 = vmul.f32 %v843_v5, %v619_v14  ;;  %v851_v3 = vmul.f32 1.25, %v2508_v61  ;;  %v852_v20 = vmul.f32 1.25, %v2516_v9  ;;  %v1003_v36 = vmul.f32 0.8333333, %v2291_v23 }
  0xac   : > { %1932 = vrot.lane.b32.xlu1 %v1931_v63, %s2019_s5  ;;  %v839_v21 = vadd.f32 %v835_v59, %v827_v42  ;;  %v840_v0 = vadd.f32 %v836_v40, %v828_v31  ;;  %v848_v50 = vmul.f32 %v844_v10, %v620_v52  ;;  %v1004_v24 = vmul.f32 0.8333333, %v2296_v33  ;;  %v1844_v33 = vld [vmem:[#allocation2 + $0x70] sm:$0xff]  ;;  %v2906_v52 = vld [vmem:[#allocation24_spill] sm:$0xff] }
  0xad   : > { %v855_v1 = vmul.f32 %v851_v3, %v2539_v27  ;;  %v856_v26 = vmul.f32 %v852_v20, %v2544_v56  ;;  %v1011_v28 = vmul.f32 0.8333333, %v2508_v61  ;;  %v1012_v47 = vmul.f32 0.8333333, %v2516_v9  ;;  %v1836_v27 = vld [vmem:[#allocation2 + $0x30] sm:$0xff]  ;;  %1444 = vmatpush.bf16.msra.mxu1 %v1844_v33  ;;  %v1843_v59 = vld [vmem:[#allocation2 + $0x68] sm:$0xff] }
  0xae   : > { %v995_v29 = vmul.f32 %v991_v58, %v839_v21  ;;  %v996_v62 = vmul.f32 %v992_v54, %v840_v0  ;;  %v1007_v23 = vmul.f32 %v1003_v36, %v839_v21  ;;  %v1008_v12 = vmul.f32 %v1004_v24, %v840_v0  ;;  %v2908_v54 = vld [vmem:[#allocation18_spill] sm:$0xff]  ;;  %1849 = vmatpush.bf16.msra.mxu3 %v1836_v27  ;;  %v1835_v40 = vld [vmem:[#allocation2 + $0x28] sm:$0xff]  ;;  %v2910_v3 = vld [vmem:[#allocation19_spill] sm:$0xff] }
  0xaf   : > { %v859_v32 = vadd.f32 %v855_v1, %v847_v13  ;;  %v860_v42 = vadd.f32 %v856_v26, %v848_v50  ;;  %v1023_v31 = vmul.f32 0.8333333, %v1728_v55  ;;  %v1024_v39 = vmul.f32 0.8333333, %v1729_v18  ;;  %1425 = vmatpush.bf16.msra.mxu0 %v1836_v27  ;;  %v2911_v21 = vld [vmem:[#allocation7_spill] sm:$0xff]  ;;  %v2912_v50 = vld [vmem:[#allocation25_spill] sm:$0xff]  ;;  %1469 = vmatpush.bf16.msra.mxu2 %v1846_v4 }
  0xb0   : > { %v999_v46 = vadd.f32 %v995_v29, %v987_v45  ;;  %v1000_v56 = vadd.f32 %v996_v62, %v988_v6  ;;  %v841_v61 = vmul.f32 1.25, %v2443_v2  ;;  %v842_v9 = vmul.f32 1.25, %v2446_v35  ;;  %v2907_v6 = vld [vmem:[#allocation5_spill] sm:$0xff]  ;;  %v1842_v29 = vld [vmem:[#allocation2 + $0x60] sm:$0xff] }
  0xb1   : > { %v1015_v44 = vmul.f32 %v1011_v28, %v859_v32  ;;  %v1016_v7 = vmul.f32 %v1012_v47, %v860_v42  ;;  %v2632_v53 = vmul.f32 %v1023_v31, %v859_v32  ;;  %v2634_v5 = vmul.f32 %v1024_v39, %v860_v42  ;;  %v2913_v28 = vld [vmem:[#allocation26_spill] sm:$0xff]  ;;  %v1834_v62 = vld [vmem:[#allocation2 + $0x20] sm:$0xff]  ;;  %1445 = vmatpush.bf16.msra.mxu1 %v1843_v59 }
  0xb2   : > { %v1901_v55 = vpack.i.bf16 %v1000_v56, %v999_v46  ;;  %v845_v18 = vmul.f32 %v841_v61, %v2461_v48  ;;  %v849_v8 = vmul.f32 1.25, %v2167_v34  ;;  %v846_v45 = vmul.f32 %v842_v9, %v2906_v52  ;;  %v2909_v48 = vld [vmem:[#allocation6_spill] sm:$0xff]  ;;  %1850 = vmatpush.bf16.msra.mxu3 %v1835_v40 }
  0xb3   : > { %v1019_v14 = vadd.f32 %v1015_v44, %v1007_v23  ;;  %v850_v58 = vmul.f32 1.25, %v2907_v6  ;;  %v1001_v63 = vmul.f32 0.8333333, %v2908_v54  ;;  %v1020_v10 = vadd.f32 %v1016_v7, %v1008_v12  ;;  %v2655_v23 = vld [vmem:[%s2064_s28 + $0x18] sm:$0xff]  ;;  %1426 = vmatpush.bf16.msra.mxu0 %v1835_v40 }
  0xb4   : > { %1902 = vrot.lane.b32.xlu2 %v1901_v55, %s2019_s5  ;;  %v853_v13 = vmul.f32 %v849_v8, %v2909_v48  ;;  %v1002_v20 = vmul.f32 0.8333333, %v2910_v3  ;;  %v1009_v36 = vmul.f32 0.8333333, %v2167_v34  ;;  %v1010_v1 = vmul.f32 0.8333333, %v2907_v6 }
  0xb5   : > { %v854_v0 = vmul.f32 %v850_v58, %v2911_v21  ;;  %v1005_v24 = vmul.f32 %v1001_v63, %v2912_v50  ;;  %v1022_v16 = vmul.f32 0.8333333, %v2446_v35  ;;  %vm463_vm3 = vcmp.ge.f32.partialorder %v2651_v11, 1.8  ;;  %1446 = vmatpush.bf16.msra.mxu1 %v1842_v29  ;;  %v1833_v8 = vld [vmem:[#allocation2 + $0x18] sm:$0xff]  ;;  %v2687_v29 = vld [vmem:[%s2064_s28] sm:$0xff] }
  0xb6   : > { %v857_v26 = vadd.f32 %v853_v13, %v845_v18  ;;  %v1006_v47 = vmul.f32 %v1002_v20, %v2913_v28  ;;  %vm464_vm0 = vcmp.ge.f32.partialorder %v2655_v23, 1.8  ;;  %vm467_vm5 = vcmp.lt.f32.partialorder %v2651_v11, 2.2  ;;  %1851 = vmatpush.bf16.msra.mxu3 %v1834_v62  ;;  %v1841_v18 = vld [vmem:[#allocation2 + $0x58] sm:$0xff]  ;;  %v2914_v20 = vld [vmem:[#allocation9_spill] sm:$0xff] }
  0xb7   : > { %v858_v34 = vadd.f32 %v854_v0, %v846_v45  ;;  %vm468_vm6 = vcmp.lt.f32.partialorder %v2655_v23, 2.2  ;;  %v1906_v12 = vpack.i.bf16 %v1020_v10, %v1019_v14  ;;  %vm471_vm7 = vmand %vm463_vm3, %vm467_vm5  ;;  %v1748_v32 = vadd.f32 -1.4, %v2651_v11  ;;  %1427 = vmatpush.bf16.msra.mxu0 %v1834_v62 }
  0xb8   : > { %v1013_v35 = vmul.f32 %v1009_v36, %v857_v26  ;;  %v1749_v42 = vadd.f32 -1.4, %v2655_v23  ;;  %v1021_v39 = vmul.f32 0.8333333, %v2443_v2  ;;  %vm472_vm8 = vmand %vm464_vm0, %vm468_vm6  ;;  %v747_v27 = vsub.f32 2.2, %v2651_v11 }
  0xb9   : > { %v1014_v31 = vmul.f32 %v1010_v1, %v858_v34  ;;  %v1026_v33 = vmul.f32 %v1022_v16, %v858_v34  ;;  %v1708_v56 = vsel %vm471_vm7, 1.0, %v2894_v37  ;;  %v739_v61 = vmul.f32 2.5, %v1748_v32  ;;  %1447 = vmatpush.bf16.msra.mxu1 %v1841_v18  ;;  %v2691_v34 = vld [vmem:[%s2064_s28 + $0x8] sm:$0xff] }
  0xba   : > { %v1017_v46 = vadd.f32 %v1013_v35, %v1005_v24  ;;  %v740_v9 = vmul.f32 2.5, %v1749_v42  ;;  %v748_v44 = vsub.f32 2.2, %v2655_v23  ;;  %v751_v7 = vmul.f32 2.5, %v747_v27  ;;  %1852 = vmatpush.bf16.msra.mxu3 %v1833_v8 }
  0xbb   : > { %v1018_v41 = vadd.f32 %v1014_v31, %v1006_v47  ;;  %v923_v55 = vmul.f32 1.25, %v2569_v57  ;;  %v1709_v2 = vsel %vm472_vm8, 1.0, %v2894_v37  ;;  %v743_v4 = vmul.f32 %v2575_v38, %v739_v61  ;;  %1428 = vmatpush.bf16.msra.mxu0 %v1833_v8  ;;  %v2916_v8 = vld [vmem:[#allocation11_spill] sm:$0xff] }
  0xbc   : > { %1907 = vrot.lane.b32.xlu2 %v1906_v12, %s2017_s29  ;;  %v744_v14 = vmul.f32 %v2581_v19, %v740_v9  ;;  %v924_v52 = vmul.f32 1.25, %v2572_v43  ;;  %v752_v6 = vmul.f32 2.5, %v748_v44  ;;  %v755_v58 = vmul.f32 %v1708_v56, %v751_v7 }
  0xbd   : > { %v1921_v45 = vpack.i.bf16 %v1018_v41, %v1017_v46  ;;  %v931_v54 = vmul.f32 1.25, %v747_v27  ;;  %v1025_v57 = vmul.f32 %v1021_v39, %v857_v26  ;;  %v927_v63 = vmul.f32 %v923_v55, %v2594_v15  ;;  %v2915_v15 = vld [vmem:[#allocation8_spill] sm:$0xff]  ;;  %v2700_v55 = vpop.permute.xlu0 %1882 }
  0xbe   : > { %v756_v59 = vmul.f32 %v1709_v2, %v752_v6  ;;  %v759_v40 = vadd.f32 %v755_v58, %v743_v4  ;;  %v932_v10 = vmul.f32 1.25, %v748_v44  ;;  %v1083_v48 = vmul.f32 0.8333333, %v2537_v25  ;;  %v2917_v4 = vld [vmem:[#allocation10_spill] sm:$0xff]  ;;  %v2919_v58 = vld [vmem:[#allocation16_spill] sm:$0xff] }
  0xbf   : > { %v928_v38 = vmul.f32 %v924_v52, %v2596_v51  ;;  %v1084_v19 = vmul.f32 0.8333333, %v2542_v49  ;;  %v1091_v3 = vmul.f32 0.8333333, %v747_v27  ;;  %v2677_v36 = vadd.f32 %v2914_v20, %v1026_v33  ;;  %v2918_v52 = vld [vmem:[#allocation17_spill] sm:$0xff] }
  0xc0   : > { %v760_v43 = vadd.f32 %v756_v59, %v744_v14  ;;  %v935_v13 = vmul.f32 %v931_v54, %v759_v40  ;;  %v2680_v21 = vadd.f32 %v2915_v15, %v1025_v57  ;;  %v1087_v50 = vmul.f32 %v1083_v48, %v2606_v22 }
  0xc1   : > { %v1092_v24 = vmul.f32 0.8333333, %v748_v44  ;;  %v1088_v51 = vmul.f32 %v1084_v19, %v2608_v30  ;;  %v1750_v62 = vmul.f32 -1.442695, %v2687_v29  ;;  %v1751_v22 = vmul.f32 -1.442695, %v2691_v34  ;;  %v2698_v44 = vpop.permute.xlu1 %1892 }
  0xc2   : > { %v936_v0 = vmul.f32 %v932_v10, %v760_v43  ;;  %v939_v25 = vadd.f32 %v935_v13, %v927_v63  ;;  %v495_v42 = vsub.f32 -1.4, %v2651_v11  ;;  %v496_v31 = vsub.f32 -1.4, %v2655_v23 }
  0xc3   : > { %1943 = vpow2.f32 %v1750_v62  ;;  %v494_v39 = vsub.f32 -1.4, %v2691_v34  ;;  %v493_v33 = vsub.f32 -1.4, %v2687_v29  ;;  %v1895_v57 = vunpack.i.h.bf16 %v2698_v44 }
  0xc4   : > { %1922 = vrot.lane.b32.xlu2 %v1921_v45, %s2017_s29  ;;  %v940_v49 = vadd.f32 %v936_v0, %v928_v38  ;;  %v1095_v1 = vmul.f32 %v1091_v3, %v939_v25  ;;  %1945 = vpow2.f32 %v1751_v22  ;;  %v499_v27 = vmul.f32 2.5, %v495_v42  ;;  %v1840_v22 = vld [vmem:[#allocation2 + $0x50] sm:$0xff] }
  0xc5   : > { %v500_v46 = vmul.f32 2.5, %v496_v31  ;;  %v498_v56 = vmul.f32 2.5, %v494_v39  ;;  %v497_v9 = vmul.f32 2.5, %v493_v33  ;;  %vm1277_vm10 = vcmask 261120   ;;  %1448 = vmatpush.bf16.msra.mxu1 %v1840_v22 }
  0xc6   : > { %v1096_v26 = vmul.f32 %v1092_v24, %v940_v49  ;;  %v1099_v28 = vadd.f32 %v1095_v1, %v1087_v50  ;;  %v2706_v14 = vmul.f32 %v2917_v4, %v499_v27  ;;  %v1885_v59 = vunpack.i.h.bf16 %v2700_v55 }
  0xc7   : > { %v2703_v2 = vmul.f32 %v2916_v8, %v500_v46  ;;  %v2709_v45 = vmul.f32 %v2918_v52, %v498_v56  ;;  %v2712_v54 = vmul.f32 %v2919_v58, %v497_v9  ;;  %v1752_v10 = vmul.f32 -1.442695, %v2651_v11  ;;  %v1839_v46 = vld [vmem:[#allocation2 + $0x48] sm:$0xff] }
  0xc8   : > { %v1100_v47 = vadd.f32 %v1096_v26, %v1088_v51  ;;  %v1753_v48 = vmul.f32 -1.442695, %v2655_v23  ;;  %v1712_v13 = vadd.f32 2.2, %v2651_v11  ;;  %vm263_vm1 = vcmp.ge.f32.partialorder %v2651_v11, -2.2 }
  0xc9   : > { %v1944_v12 = vpop.eup %1943  ;;  %vm264_vm2 = vcmp.ge.f32.partialorder %v2655_v23, -2.2  ;;  %vm267_vm0 = vcmp.lt.f32.partialorder %v2651_v11, -1.8  ;;  %vm268_vm5 = vcmp.lt.f32.partialorder %v2655_v23, -1.8  ;;  %v1884_v62 = vunpack.i.l.bf16 %v2700_v55  ;;  %1449 = vmatpush.bf16.msra.mxu1 %v1839_v46 }
  0xca   : > { %v1936_v16 = vpack.i.bf16 %v1100_v47, %v1099_v28  ;;  %v1946_v35 = vpop.eup %1945  ;;  %v1113_v30 = vadd.f32 1.0, %v1944_v12  ;;  %vm271_vm6 = vmand %vm263_vm1, %vm267_vm0  ;;  %v1713_v28 = vadd.f32 2.2, %v2655_v23  ;;  %v487_v47 = vmul.f32 2.5, %v1712_v13  ;;  %v1831_v9 = vld [vmem:[#allocation2 + $0x8] sm:$0xff] }
  0xcb   : > { %v1114_v32 = vadd.f32 1.0, %v1946_v35  ;;  %v1832_v35 = vld [vmem:[#allocation2 + $0x10] sm:$0xff]  ;;  %v1293_v42 = vsel %vm1277_vm10, %v2677_v36, %v1885_v59  ;;  %vm272_vm7 = vmand %vm264_vm2, %vm268_vm5  ;;  %v763_v33 = vmul.f32 1.25, %v1712_v13  ;;  %vm262_vm8 = vcmp.ge.f32.partialorder %v2691_v34, -2.2 }
  0xcc   : > { %1937 = vrot.lane.b32.xlu2 %v1936_v16, %s2017_s29  ;;  %1947 = vrcp.f32 %v1113_v30  ;;  %v1128_v38 = vand.u32 2147483648, %v1113_v30  ;;  %vm1122_vm11 = vweird.f32 %v1113_v30  ;;  %v1126_v20 = vand.u32 2147483647, %v1113_v30  ;;  %1853 = vmatpush.bf16.msra.mxu3 %v1832_v35 }
  0xcd   : > { %1949 = vrcp.f32 %v1114_v32  ;;  %v1143_v43 = vand.u32 2147483648, %v1114_v32  ;;  %vm1137_vm12 = vweird.f32 %v1114_v32  ;;  %v1141_v50 = vand.u32 2147483647, %v1114_v32  ;;  %1429 = vmatpush.bf16.msra.mxu0 %v1832_v35 }
  0xce   : > { %v1129_v15 = vor.u32 1.1754944e-38, %v1128_v38  ;;  %vm1127_vm14 = vcmp.eq.f32.partialorder %v1126_v20, 8.507059e+37  ;;  %1951 = vpow2.f32 %v1752_v10  ;;  %v1894_v16 = vunpack.i.l.bf16 %v2698_v44  ;;  %v2920_v10 = vld [vmem:[#allocation14_spill] sm:$0xff] }
  0xcf   : > { %v1144_v24 = vor.u32 1.1754944e-38, %v1143_v43  ;;  %vm1142_vm3 = vcmp.eq.f32.partialorder %v1141_v50, 8.507059e+37  ;;  %v488_v31 = vmul.f32 2.5, %v1713_v28  ;;  %v1669_v56 = vsel %vm272_vm7, 1.0, %v2894_v37  ;;  %v1830_v43 = vld [vmem:[#allocation2] sm:$0xff] }
  0xd0   : > { %1953 = vpow2.f32 %v1753_v48  ;;  %v764_v55 = vmul.f32 1.25, %v1713_v28  ;;  %v1710_v8 = vadd.f32 2.2, %v2687_v29  ;;  %v1711_v58 = vadd.f32 2.2, %v2691_v34  ;;  %1854 = vmatpush.bf16.msra.mxu3 %v1831_v9 }
  0xd1   : > { %1430 = vmatpush.bf16.msra.mxu0 %v1831_v9  ;;  %v2926_v9 = vld [vmem:[#allocation21_spill] sm:$0xff] }
  0xd2   : > { %v1948_v61 = vpop.eup %1947  ;;  %v486_v38 = vmul.f32 2.5, %v1711_v58  ;;  %v942_v44 = vmul.f32 0.8333333, %v1711_v58 }
  0xd3   : > { %v1950_v41 = vpop.eup %1949  ;;  %v1118_v7 = vmul.f32 %v1948_v61, %v1113_v30  ;;  %vm1123_vm9 = vweird.f32 %v1948_v61  ;;  %v1668_v30 = vsel %vm271_vm6, 1.0, %v2894_v37 }
  0xd4   : > { %v1133_v18 = vmul.f32 %v1950_v41, %v1114_v32  ;;  %vm1124_vm4 = vmor %vm1122_vm11, %vm1123_vm9  ;;  %vm1138_vm13 = vweird.f32 %v1950_v41  ;;  %v1888_v32 = vpop.permute.xlu0 %1887  ;;  %v491_v39 = vmul.f32 %v1668_v30, %v487_v47  ;;  %vm266_vm11 = vcmp.lt.f32.partialorder %v2691_v34, -1.8  ;;  %v1952_v4 = vpop.eup %1951  ;;  %1855 = vmatpush.bf16.msra.mxu3 %v1830_v43  ;;  %v2924_v30 = vld [vmem:[#allocation20_spill] sm:$0xff] }
  0xd5   : > { %v1119_v6 = vsub.f32 1.0, %v1118_v7  ;;  %vm1139_vm15 = vmor %vm1137_vm12, %vm1138_vm13  ;;  %v1890_v36 = vunpack.i.h.bf16 %v1888_v32  ;;  %vm265_vm12 = vcmp.lt.f32.partialorder %v2687_v29, -1.8  ;;  %1431 = vmatpush.bf16.msra.mxu0 %v1830_v43 }
  0xd6   : > { %v1134_v63 = vsub.f32 1.0, %v1133_v18  ;;  %v507_v7 = vadd.f32 %v2706_v14, %v491_v39  ;;  %v1889_v18 = vunpack.i.l.bf16 %v1888_v32  ;;  %vm270_vm9 = vmand %vm262_vm8, %vm266_vm11  ;;  %v1292_v14 = vsel %vm1277_vm10, %v2680_v21, %v1884_v62 }
  0xd7   : > { %v1120_v40 = vmul.f32 %v1948_v61, %v1119_v6  ;;  %v1667_v59 = vsel %vm270_vm9, 1.0, %v2894_v37  ;;  %v2762_v39 = vadd.f32 %v2562_v60, %v2632_v53  ;;  %v2927_v60 = vld [vmem:[#allocation23_spill] sm:$0xff] }
  0xd8   : > { %v1135_v19 = vmul.f32 %v1950_v41, %v1134_v63  ;;  %v767_v6 = vmul.f32 %v763_v33, %v507_v7  ;;  %v944_v63 = vmul.f32 0.8333333, %v1713_v28  ;;  %v761_v28 = vmul.f32 1.25, %v1710_v8 }
  0xd9   : > { %v1121_v3 = vadd.f32 %v1948_v61, %v1120_v40 }
  0xda   : > { %v1136_v0 = vadd.f32 %v1950_v41, %v1135_v19  ;;  %v779_v48 = vadd.f32 %v2920_v10, %v767_v6  ;;  %v1838_v19 = vld [vmem:[#allocation2 + $0x40] sm:$0xff]  ;;  %v1898_v10 = vpop.permute.xlu1 %1897 }
  0xdb   : > { %v1125_v25 = vsel %vm1124_vm4, %v1948_v61, %v1121_v3  ;;  %v943_v61 = vmul.f32 0.8333333, %v1712_v13  ;;  %vm261_vm4 = vcmp.ge.f32.partialorder %v2687_v29, -2.2  ;;  %v1115_v13 = vadd.f32 1.0, %v1952_v4  ;;  %v2921_v3 = vld [vmem:[#allocation12_spill] sm:$0xff]  ;;  %1450 = vmatpush.bf16.msra.mxu1 %v1838_v19 }
  0xdc   : > { %v1130_v49 = vsel %vm1127_vm14, %v1129_v15, %v1125_v25  ;;  %v1140_v51 = vsel %vm1139_vm15, %v1950_v41, %v1136_v0  ;;  %v492_v41 = vmul.f32 %v1669_v56, %v488_v31  ;;  %vm269_vm13 = vmand %vm261_vm4, %vm265_vm12  ;;  %vm1282_vm14 = vcmask 523264  }
  0xdd   : > { %v1177_v1 = vmul.f32 %v2687_v29, %v1130_v49  ;;  %v1145_v26 = vsel %vm1142_vm3, %v1144_v24, %v1140_v51  ;;  %vm1287_vm15 = vcmask 785408   ;;  %v1666_v21 = vsel %vm269_vm13, 1.0, %v2894_v37  ;;  %v2922_v37 = vld [vmem:[#allocation15_spill] sm:$0xff] }
  0xde   : > { %v1178_v12 = vmul.f32 %v2691_v34, %v1145_v26  ;;  %v508_v52 = vadd.f32 %v2703_v2, %v492_v41  ;;  %v485_v2 = vmul.f32 2.5, %v1710_v8  ;;  %v1954_v34 = vpop.eup %1953  ;;  %v947_v15 = vmul.f32 %v943_v61, %v779_v48 }
  0xdf   : > { %v1296_v29 = vsel %vm1282_vm14, %v1292_v14, %v1889_v18  ;;  %v1297_v0 = vsel %vm1282_vm14, %v1293_v42, %v1890_v36  ;;  %v490_v24 = vmul.f32 %v1667_v59, %v486_v38  ;;  %v762_v49 = vmul.f32 1.25, %v1711_v58 }
  0xe0   : > { %v1306_v27 = vpack.c.bf16 %v1178_v12, %v1177_v1  ;;  %v768_v40 = vmul.f32 %v764_v55, %v508_v52  ;;  %v1300_v25 = vsel %vm1287_vm15, %v1296_v29, %v1894_v16  ;;  %v1301_v50 = vsel %vm1287_vm15, %v1297_v0, %v1895_v57  ;;  %v2923_v12 = vld [vmem:[#allocation13_spill] sm:$0xff] }
  0xe1   : > { %v959_v1 = vadd.f32 %v2922_v37, %v947_v15  ;;  %v1305_v26 = vpack.c.bf16 %v1301_v50, %v1300_v25  ;;  %v506_v47 = vadd.f32 %v2709_v45, %v490_v24  ;;  %v489_v62 = vmul.f32 %v1666_v21, %v485_v2 }
  0xe2   : > { %1826 = vmatmul.msk.bf16.vlgmr.msra.gmra.mxu2 %vm1277_vm10, %v1306_v27  ;;  %v780_v20 = vadd.f32 %v2921_v3, %v768_v40  ;;  %v1116_v22 = vadd.f32 1.0, %v1954_v34  ;;  %1955 = vrcp.f32 %v1115_v13  ;;  %v941_v42 = vmul.f32 0.8333333, %v1710_v8  ;;  %v2925_v27 = vld [vmem:[#allocation22_spill] sm:$0xff] }
  0xe3   : > { %1451 = vmatmul.bf16.vlgmr.msra.gmra.mxu1 %v1305_v26  ;;  %v766_v16 = vmul.f32 %v762_v49, %v506_v47  ;;  %v505_v57 = vadd.f32 %v2712_v54, %v489_v62  ;;  %v2767_v56 = vadd.f32 %v2560_v17, %v2634_v5  ;;  %v1156_v7 = vand.u32 2147483647, %v1115_v13 }
  0xe4   : > { %v948_v51 = vmul.f32 %v944_v63, %v780_v20  ;;  %1957 = vrcp.f32 %v1116_v22  ;;  %v1158_v55 = vand.u32 2147483648, %v1115_v13  ;;  %vm1152_vm1 = vweird.f32 %v1115_v13 }
  0xe5   : > { %v778_v32 = vadd.f32 %v2924_v30, %v766_v16  ;;  %v765_v31 = vmul.f32 %v761_v28, %v505_v57  ;;  %vm1157_vm0 = vcmp.eq.f32.partialorder %v1156_v7, 8.507059e+37  ;;  %vm1167_vm5 = vweird.f32 %v1116_v22 }
  0xe6   : > { %v960_v35 = vadd.f32 %v2923_v12, %v948_v51  ;;  %v1159_v52 = vor.u32 1.1754944e-38, %v1158_v55  ;;  %v1173_v17 = vand.u32 2147483648, %v1116_v22  ;;  %v1171_v58 = vand.u32 2147483647, %v1116_v22 }
  0xe7   : > { %v946_v33 = vmul.f32 %v942_v44, %v778_v32  ;;  %v777_v46 = vadd.f32 %v2925_v27, %v765_v31  ;;  %v1900_v19 = vunpack.i.h.bf16 %v1898_v10  ;;  %v1899_v43 = vunpack.i.l.bf16 %v1898_v10 }
  0xe8   : > { %v1956_v45 = vpop.eup %1955  ;;  %v1174_v40 = vor.u32 1.1754944e-38, %v1173_v17  ;;  %vm1172_vm8 = vcmp.eq.f32.partialorder %v1171_v58, 8.507059e+37 }
  0xe9   : > { %v1148_v61 = vmul.f32 %v1956_v45, %v1115_v13  ;;  %v958_v54 = vadd.f32 %v2926_v9, %v946_v33  ;;  %v945_v41 = vmul.f32 %v941_v42, %v777_v46  ;;  %vm1153_vm2 = vweird.f32 %v1956_v45 }
  0xea   : > { %v1958_v18 = vpop.eup %1957  ;;  %vm1154_vm3 = vmor %vm1152_vm1, %vm1153_vm2  ;;  %v1281_v20 = vsel %vm1277_vm10, %v960_v35, %v1900_v19  ;;  %v1280_v15 = vsel %vm1277_vm10, %v959_v1, %v1899_v43 }
  0xeb   : > { %v1149_v36 = vsub.f32 1.0, %v1148_v61  ;;  %v957_v53 = vadd.f32 %v2927_v60, %v945_v41  ;;  %v1163_v4 = vmul.f32 %v1958_v18, %v1116_v22  ;;  %vm1168_vm6 = vweird.f32 %v1958_v18 }
  0xec   : > { %vm1169_vm7 = vmor %vm1167_vm5, %vm1168_vm6 }
  0xed   : > { %v1150_v8 = vmul.f32 %v1956_v45, %v1149_v36  ;;  %v1164_v6 = vsub.f32 1.0, %v1163_v4 }
  0xee   : > { %v1913_v29 = vpop.permute.xlu0 %1912 }
  0xef   : > { %v1151_v5 = vadd.f32 %v1956_v45, %v1150_v8  ;;  %v1165_v63 = vmul.f32 %v1958_v18, %v1164_v6  ;;  %v1915_v26 = vunpack.i.h.bf16 %v1913_v29 }
  0xf1   : > { %v1155_v14 = vsel %vm1154_vm3, %v1956_v45, %v1151_v5  ;;  %v1166_v48 = vadd.f32 %v1958_v18, %v1165_v63  ;;  %v1279_v12 = vsel %vm1277_vm10, %v958_v54, %v1915_v26 }
  0xf2   : > { %v1160_v59 = vsel %vm1157_vm0, %v1159_v52, %v1155_v14 }
  0xf3   : > { %v1170_v38 = vsel %vm1169_vm7, %v1958_v18, %v1166_v48  ;;  %v1179_v34 = vmul.f32 %v2651_v11, %v1160_v59 }
  0xf4   : > { %v1175_v21 = vsel %vm1172_vm8, %v1174_v40, %v1170_v38 }
  0xf5   : > { %v1180_v13 = vmul.f32 %v2655_v23, %v1175_v21  ;;  %v1914_v23 = vunpack.i.l.bf16 %v1913_v29 }
  0xf7   : > { %v1309_v3 = vpack.c.bf16 %v1180_v13, %v1179_v34  ;;  %v1278_v35 = vsel %vm1277_vm10, %v957_v53, %v1914_v23 }
  0xf9   : > { %1827 = vmatmul.msk.bf16.gmra.mxu2 %vm1277_vm10, %v1309_v3 }
  0xfa   : > { %v1918_v49 = vpop.permute.xlu1 %1917 }
  0xfb   : > { %v1920_v62 = vunpack.i.h.bf16 %v1918_v49  ;;  %v1919_v22 = vunpack.i.l.bf16 %v1918_v49 }
  0xfd   : > { %v1283_v57 = vsel %vm1282_vm14, %v1278_v35, %v1919_v22  ;;  %v1284_v30 = vsel %vm1282_vm14, %v1279_v12, %v1920_v62 }
 0x10e   : > { %v1903_v2 = vpop.permute.xlu2 %1902 }
 0x10f   : > { %v1905_v0 = vunpack.i.h.bf16 %v1903_v2  ;;  %v1904_v25 = vunpack.i.l.bf16 %v1903_v2 }
 0x111   : > { %v1285_v24 = vsel %vm1282_vm14, %v1280_v15, %v1904_v25  ;;  %v1286_v11 = vsel %vm1282_vm14, %v1281_v20, %v1905_v0  ;;  %v1928_v16 = vpop.permute.xlu0 %1927 }
 0x112   : > { %v1930_v31 = vunpack.i.h.bf16 %v1928_v16  ;;  %v1929_v45 = vunpack.i.l.bf16 %v1928_v16 }
 0x114   : > { %v1295_v41 = vsel %vm1277_vm10, %v2767_v56, %v1930_v31  ;;  %v1294_v7 = vsel %vm1277_vm10, %v2762_v39, %v1929_v45 }
 0x116   : > { %v1908_v50 = vpop.permute.xlu2 %1907 }
 0x117   : > { %v1910_v51 = vunpack.i.h.bf16 %v1908_v50  ;;  %v1909_v37 = vunpack.i.l.bf16 %v1908_v50 }
 0x119   : > { %v1290_v28 = vsel %vm1287_vm15, %v1285_v24, %v1909_v37  ;;  %v1291_v47 = vsel %vm1287_vm15, %v1286_v11, %v1910_v51 }
 0x11a   : > { %v1307_v1 = vpack.c.bf16 %v1291_v47, %v1290_v28 }
 0x11c   : > { %1437 = vmatmul.bf16.vlgmr.msra.gmra.mxu3 %v1307_v1 }
 0x11e   : > { %v1923_v44 = vpop.permute.xlu2 %1922  ;;  %v1933_v33 = vpop.permute.xlu1 %1932 }
 0x11f   : > { %v1925_v32 = vunpack.i.h.bf16 %v1923_v44  ;;  %v1924_v42 = vunpack.i.l.bf16 %v1923_v44  ;;  %v1935_v9 = vunpack.i.h.bf16 %v1933_v33  ;;  %v1934_v54 = vunpack.i.l.bf16 %v1933_v33 }
 0x121   : > { %v1288_v27 = vsel %vm1287_vm15, %v1283_v57, %v1924_v42  ;;  %v1289_v46 = vsel %vm1287_vm15, %v1284_v30, %v1925_v32  ;;  %v1298_v36 = vsel %vm1282_vm14, %v1294_v7, %v1934_v54  ;;  %v1299_v18 = vsel %vm1282_vm14, %v1295_v41, %v1935_v9  ;;  %v1941_v41 = vld [vmem:[%s2855_s2] ss:$0 sm:$0xff] }
 0x122   : > { %v1304_v61 = vpack.c.bf16 %v1289_v46, %v1288_v27 }
 0x124   : > { %1432 = vmatmul.bf16.vlgmr.msra.gmra.mxu0 %v1304_v61 }
 0x126   : > { %v1938_v55 = vpop.permute.xlu2 %1937 }
 0x127   : > { %v1940_v60 = vunpack.i.h.bf16 %v1938_v55  ;;  %v1939_v53 = vunpack.i.l.bf16 %v1938_v55 }
 0x129   : > { %v1302_v8 = vsel %vm1287_vm15, %v1298_v36, %v1939_v53  ;;  %v1303_v4 = vsel %vm1287_vm15, %v1299_v18, %v1940_v60  ;;  %v1942_v60 = vld [vmem:[%s2856_s3] ss:$0 sm:$0xff] }
 0x12a   : > { %v1308_v52 = vpack.c.bf16 %v1303_v4, %v1302_v8 }
 0x12c   : > { %1456 = vmatmul.bf16.gmra.mxu1 %v1308_v52 }
 0x160   : > { %v1452_v5 = vpop.f32.mrf.mxu1 }
 0x165   : > { %v1471_v17 = vpop.f32.mrf.mxu2 }
 0x168   : > { %v1454_v6 = vpop.f32.mrf.mxu1 }
 0x16d   : > { %v1473_v56 = vpop.f32.mrf.mxu2 }
 0x17c   : > { %v1476_v10 = vpop.f32.mrf.mxu2 }
 0x184   : > { %v1478_v3 = vpop.f32.mrf.mxu2 }
 0x19f   : > { %v1438_v59 = vpop.f32.mrf.mxu3 }
 0x1a1   : > { %v1433_v58 = vpop.f32.mrf.mxu0 }
 0x1a2   : > { %v1453_v39 = vadd.f32 %v1452_v5, %v1433_v58 }
 0x1a4   : > { %v2794_v14 = vadd.f32 %v1471_v17, %v1453_v39 }
 0x1a6   : > { %1481 = vadd.xlane.f32.xlu0 %v2794_v14  ;;  %v1493_v63 = vmul.f32 %v2794_v14, %v2794_v14 }
 0x1a7   : > { %v1440_v43 = vpop.f32.mrf.mxu3 }
 0x1a8   : > { %1497 = vadd.xlane.f32.xlu2 %v1493_v63 }
 0x1a9   : > { %v1435_v40 = vpop.f32.mrf.mxu0  ;;  %v1457_v2 = vpop.f32.mrf.mxu1 }
 0x1aa   : > { %v1455_v48 = vadd.f32 %v1454_v6, %v1435_v40  ;;  %v1458_v38 = vadd.f32 %v1457_v2, %v1438_v59 }
 0x1ac   : > { %v2799_v34 = vadd.f32 %v1473_v56, %v1455_v48  ;;  %v2801_v19 = vadd.f32 %v1476_v10, %v1458_v38 }
 0x1ae   : > { %1483 = vadd.xlane.f32.xlu1 %v2799_v34  ;;  %v1494_v20 = vmul.f32 %v2799_v34, %v2799_v34  ;;  %v1495_v29 = vmul.f32 %v2801_v19, %v2801_v19 }
 0x1b0   : > { %1485 = vadd.xlane.f32.xlu2 %v2801_v19 }
 0x1b1   : > { %v1459_v21 = vpop.f32.mrf.mxu1 }
 0x1b2   : > { %v1460_v13 = vadd.f32 %v1459_v21, %v1440_v43 }
 0x1b4   : > { %v2807_v15 = vadd.f32 %v1478_v3, %v1460_v13 }
 0x1b6   : > { %1499 = vadd.xlane.f32.xlu1 %v1494_v20  ;;  %1487 = vadd.xlane.f32.xlu0 %v2807_v15  ;;  %v1496_v0 = vmul.f32 %v2807_v15, %v2807_v15 }
 0x1b8   : > { %1501 = vadd.xlane.f32.xlu2 %v1495_v29 }
 0x1be   : > { %1503 = vadd.xlane.f32.xlu0 %v1496_v0 }
 0x219   : > { %v1482_v25 = vpop.xlane.xlu0 %1481 }
 0x21a   : > { %v1489_v50 = vmul.f32 0.03125, %v1482_v25 }
 0x21b   : > { %v1498_v24 = vpop.xlane.xlu2 %1497 }
 0x21c   : > { %v1509_v11 = vmul.f32 %v1489_v50, %v1489_v50  ;;  %v1505_v49 = vmul.f32 0.03125, %v1498_v24  ;;  %v1517_v54 = vsub.f32 %v2794_v14, %v1489_v50 }
 0x21e   : > { %v1513_v51 = vsub.f32 %v1505_v49, %v1509_v11 }
 0x220   : > { %v1521_v37 = vadd.f32 1e-05, %v1513_v51 }
 0x221   : > { %v1484_v26 = vpop.xlane.xlu1 %1483 }
 0x222   : > { %1959 = vrsqrt.f32 %v1521_v37  ;;  %v2814_v28 = vmul.f32 0.03125, %v1484_v26  ;;  %vm1531_vm11 = vweird.f32 %v1521_v37 }
 0x223   : > { %v1486_v23 = vpop.xlane.xlu2 %1485 }
 0x224   : > { %v2816_v1 = vmul.f32 0.03125, %v1486_v23  ;;  %v1510_v12 = vmul.f32 %v2814_v28, %v2814_v28  ;;  %v1518_v38 = vsub.f32 %v2799_v34, %v2814_v28 }
 0x226   : > { %v1511_v30 = vmul.f32 %v2816_v1, %v2816_v1  ;;  %v1519_v3 = vsub.f32 %v2801_v19, %v2816_v1 }
 0x228   : > { %v1960_v47 = vpop.eup %1959 }
 0x229   : > { %v1526_v62 = vmul.f32 %v1960_v47, %v1521_v37  ;;  %v1500_v22 = vpop.xlane.xlu1 %1499  ;;  %v1488_v35 = vpop.xlane.xlu0 %1487  ;;  %vm1532_vm10 = vweird.f32 %v1960_v47 }
 0x22a   : > { %v1506_v16 = vmul.f32 0.03125, %v1500_v22  ;;  %v2822_v46 = vmul.f32 0.03125, %v1488_v35  ;;  %vm1533_vm9 = vmor %vm1531_vm11, %vm1532_vm10 }
 0x22b   : > { %v1527_v44 = vmul.f32 %v1960_v47, %v1526_v62  ;;  %v1502_v57 = vpop.xlane.xlu2 %1501 }
 0x22c   : > { %v1514_v32 = vsub.f32 %v1506_v16, %v1510_v12  ;;  %v1507_v42 = vmul.f32 0.03125, %v1502_v57  ;;  %v1512_v36 = vmul.f32 %v2822_v46, %v2822_v46  ;;  %v1520_v19 = vsub.f32 %v2807_v15, %v2822_v46 }
 0x22d   : > { %v1528_v31 = vmul.f32 0.5, %v1527_v44 }
 0x22e   : > { %v1522_v45 = vadd.f32 1e-05, %v1514_v32  ;;  %v1515_v33 = vsub.f32 %v1507_v42, %v1511_v30 }
 0x22f   : > { %v1529_v27 = vsub.f32 1.5, %v1528_v31 }
 0x230   : > { %1961 = vrsqrt.f32 %v1522_v45  ;;  %v1523_v61 = vadd.f32 1e-05, %v1515_v33  ;;  %vm1541_vm12 = vweird.f32 %v1522_v45 }
 0x231   : > { %v1530_v9 = vmul.f32 %v1960_v47, %v1529_v27  ;;  %v1504_v7 = vpop.xlane.xlu0 %1503 }
 0x232   : > { %1963 = vrsqrt.f32 %v1523_v61  ;;  %v1508_v18 = vmul.f32 0.03125, %v1504_v7  ;;  %vm1551_vm15 = vweird.f32 %v1523_v61 }
 0x233   : > { %v1534_v55 = vsel %vm1533_vm9, %v1960_v47, %v1530_v9 }
 0x234   : > { %v1565_v53 = vmul.f32 %v1534_v55, %v1517_v54  ;;  %v1516_v8 = vsub.f32 %v1508_v18, %v1512_v36 }
 0x236   : > { %v1962_v4 = vpop.eup %1961  ;;  %v1572_v52 = vmul.f32 %v1941_v41, %v1565_v53  ;;  %v1524_v5 = vadd.f32 1e-05, %v1516_v8 }
 0x237   : > { %v1536_v17 = vmul.f32 %v1962_v4, %v1522_v45  ;;  %vm1542_vm4 = vweird.f32 %v1962_v4 }
 0x238   : > { %v1964_v56 = vpop.eup %1963  ;;  %v1579_v6 = vadd.f32 %v1942_v60, %v1572_v52  ;;  %1965 = vrsqrt.f32 %v1524_v5  ;;  %vm1543_vm14 = vmor %vm1541_vm12, %vm1542_vm4  ;;  %vm1561_vm3 = vweird.f32 %v1524_v5 }
 0x239   : > { %v1537_v58 = vmul.f32 %v1962_v4, %v1536_v17  ;;  %v1546_v39 = vmul.f32 %v1964_v56, %v1523_v61  ;;  %vm1552_vm13 = vweird.f32 %v1964_v56 }
 0x23a   : > { %1583 = vst [vmem:[%s2838_s12] sm:$0xff] %v1579_v6  ;;  %vm1553_vm1 = vmor %vm1551_vm15, %vm1552_vm13 }
 0x23b   : > { %v1538_v14 = vmul.f32 0.5, %v1537_v58  ;;  %v1547_v63 = vmul.f32 %v1964_v56, %v1546_v39 }
 0x23d   : > { %v1539_v59 = vsub.f32 1.5, %v1538_v14  ;;  %v1548_v40 = vmul.f32 0.5, %v1547_v63 }
 0x23e   : > { %v1966_v10 = vpop.eup %1965 }
 0x23f   : > { %v1540_v48 = vmul.f32 %v1962_v4, %v1539_v59  ;;  %v1549_v2 = vsub.f32 1.5, %v1548_v40  ;;  %v1556_v43 = vmul.f32 %v1966_v10, %v1524_v5  ;;  %vm1562_vm2 = vweird.f32 %v1966_v10 }
 0x240   : > { %vm1563_vm0 = vmor %vm1561_vm3, %vm1562_vm2 }
 0x241   : > { %v1544_v21 = vsel %vm1543_vm14, %v1962_v4, %v1540_v48  ;;  %v1550_v13 = vmul.f32 %v1964_v56, %v1549_v2  ;;  %v1557_v29 = vmul.f32 %v1966_v10, %v1556_v43 }
 0x242   : > { %v1566_v20 = vmul.f32 %v1544_v21, %v1518_v38 }
 0x243   : > { %v1554_v0 = vsel %vm1553_vm1, %v1964_v56, %v1550_v13  ;;  %v1558_v24 = vmul.f32 0.5, %v1557_v29 }
 0x244   : > { %v1573_v25 = vmul.f32 %v1941_v41, %v1566_v20  ;;  %v1567_v50 = vmul.f32 %v1554_v0, %v1519_v3 }
 0x245   : > { %v1559_v49 = vsub.f32 1.5, %v1558_v24 }
 0x246   : > { %v1580_v11 = vadd.f32 %v1942_v60, %v1573_v25  ;;  %v1574_v34 = vmul.f32 %v1941_v41, %v1567_v50 }
 0x247   : > { %v1560_v37 = vmul.f32 %v1966_v10, %v1559_v49 }
 0x248   : > { %1584 = vst [vmem:[%s2838_s12 + $0x8] sm:$0xff] %v1580_v11  ;;  %v1581_v51 = vadd.f32 %v1942_v60, %v1574_v34 }
 0x249   : > { %v1564_v26 = vsel %vm1563_vm0, %v1966_v10, %v1560_v37 }
 0x24a   : > { %1585 = vst [vmem:[%s2838_s12 + $0x10] sm:$0xff] %v1581_v51  ;;  %v1568_v23 = vmul.f32 %v1564_v26, %v1520_v19 }
 0x24c   : > { %v1575_v28 = vmul.f32 %v1941_v41, %v1568_v23 }
 0x24e   : > { %v1582_v47 = vadd.f32 %v1942_v60, %v1575_v28 }
 0x250   : > { %1586 = vst [vmem:[%s2838_s12 + $0x18] sm:$0xff] %v1582_v47 }
 0x251 PF: > { %s15_s15 = sadd.s32 1, %s2011_s15  }
 0x252   : > { %p12_p7 = scmp.ge.s32.totalorder %s15_s15, 4  }
 0x254   :  { %14 = sbr.rel (!%p12_p7) target bundleno = 1 (0x1), region = 71 }
 0x259   :  { %1609 = vsyncpa [#allocation3], 1 }
 0x25a   :  { %1611 = vsyncpa [#allocation3 + $0x1], 1 }

</bundles_post_ra>
